<compile_context>
chip_gen: v7x
topology: tpu7x:2x2x1
jax: 0.10.0
libtpu: 0.0.40
codegen_flags: <defaults>
</compile_context>

<pallas_src>
import math

import numpy as np
import jax
import jax.numpy as jnp
from jax.experimental import pallas as pl
from jax.experimental.pallas import tpu as pltpu

# ---------------- model config (small, consistent with the module) ----------------
B, S, D = 2, 8, 32            # batch, seq, hidden_size
H, HKV, DH = 4, 2, 8          # num_attention_heads, num_key_value_heads, head_dim
I = 64                        # intermediate_size
ROT_DIM = int(0.5 * D // H)   # partial_rotary_factor * hidden_size // num_heads = 4
HALF = ROT_DIM // 2
ROPE_THETA = 10000.0
EPS = 1e-5
QKV_DIM = H * DH + 2 * HKV * DH     # 64
REP = H // HKV
SCALE = 1.0 / math.sqrt(DH)         # softmax_scale=None -> 1/sqrt(head_dim)
NEG = -1e30


# ---------------------------------- fused kernel ----------------------------------
def phi_layer_kernel(x_ref, ln_g_ref, ln_b_ref,
                     wqkv_ref, bqkv_ref,
                     cosq_ref, sinq_ref, pq_ref,
                     cosk_ref, sink_ref, pk_ref,
                     mask_ref,
                     wo_ref, bo_ref,
                     wfc1_ref, bfc1_ref,
                     wfc2_ref, bfc2_ref,
                     o_ref):
    x = x_ref[0].astype(jnp.float32)                                  # (S, D)

    # ---- input_layernorm ----
    mean = jnp.mean(x, axis=-1, keepdims=True)
    var = jnp.mean(jnp.square(x - mean), axis=-1, keepdims=True)
    hs = (x - mean) * jax.lax.rsqrt(var + EPS)
    hs = hs * ln_g_ref[...] + ln_b_ref[...]                           # (S, D)

    # ---- fused QKV projection ----
    qkv = jnp.dot(hs, wqkv_ref[...], preferred_element_type=jnp.float32) + bqkv_ref[...]
    q = qkv[:, :H * DH]                                               # (S, 32)
    k = qkv[:, H * DH:H * DH + HKV * DH]                              # (S, 16)
    v = qkv[:, H * DH + HKV * DH:]                                    # (S, 16)

    # ---- partial rotary (rotate-half, non-interleaved) on q and k only ----
    # lane-dense formulation: x*COS + (x @ P)*SIN, P = per-head partner permutation
    q = q * cosq_ref[...] + jnp.dot(q, pq_ref[...],
                                    preferred_element_type=jnp.float32) * sinq_ref[...]
    k = k * cosk_ref[...] + jnp.dot(k, pk_ref[...],
                                    preferred_element_type=jnp.float32) * sink_ref[...]

    # ---- causal GQA attention, all heads in-kernel, no KV repeat ----
    mask = mask_ref[...]                                              # (S, S) additive bias
    ctx_heads = []
    for h in range(H):                                                # static unroll (H=4)
        g = h // REP                                                  # shared KV head
        q_h = q[:, h * DH:(h + 1) * DH]                               # (S, DH)
        k_g = k[:, g * DH:(g + 1) * DH]                               # (S, DH)
        v_g = v[:, g * DH:(g + 1) * DH]                               # (S, DH)
        s = jax.lax.dot_general(q_h, k_g, (((1,), (1,)), ((), ())),
                                preferred_element_type=jnp.float32) * SCALE + mask
        m = jnp.max(s, axis=-1, keepdims=True)
        p = jnp.exp(s - m)
        p = p * pl.reciprocal(jnp.sum(p, axis=-1, keepdims=True), approx=True)
        ctx_heads.append(jnp.dot(p, v_g, preferred_element_type=jnp.float32))
    ctx = jnp.concatenate(ctx_heads, axis=-1)                         # (S, H*DH)

    attn_out = jnp.dot(ctx, wo_ref[...], preferred_element_type=jnp.float32) + bo_ref[...]

    # ---- parallel MLP branch (PhiMLP on the same layernormed input) ----
    h1 = jnp.dot(hs, wfc1_ref[...], preferred_element_type=jnp.float32) + bfc1_ref[...]
    h1 = jax.nn.gelu(h1, approximate=True)                            # ACT2FN["gelu_new"]
    mlp_out = jnp.dot(h1, wfc2_ref[...], preferred_element_type=jnp.float32) + bfc2_ref[...]

    # ---- residual add (resid_dropout is identity in eval mode) ----
    o_ref[0] = (attn_out + mlp_out + x).astype(o_ref.dtype)


# ------------------------------ host-side constants --------------------------------
def _rope_tables(nheads):
    """Per-column COS/SIN tables and the rotate-half partner permutation P."""
    width = nheads * DH
    pos = np.arange(S, dtype=np.float32)
    inv_freq = 1.0 / (ROPE_THETA ** (np.arange(0, ROT_DIM, 2, dtype=np.float32) / ROT_DIM))
    freqs = np.outer(pos, inv_freq)                                   # (S, HALF)
    cos, sin = np.cos(freqs), np.sin(freqs)
    COS = np.ones((S, width), np.float32)
    SIN = np.zeros((S, width), np.float32)
    P = np.zeros((width, width), np.float32)
    for h in range(nheads):
        b0 = h * DH
        COS[:, b0:b0 + HALF] = cos
        COS[:, b0 + HALF:b0 + ROT_DIM] = cos
        SIN[:, b0:b0 + HALF] = -sin            # x1 gets  x1*cos - x2*sin
        SIN[:, b0 + HALF:b0 + ROT_DIM] = sin   # x2 gets  x2*cos + x1*sin
        for o in range(HALF):
            P[b0 + HALF + o, b0 + o] = 1.0     # partner of x1 column is x2 column
            P[b0 + o, b0 + HALF + o] = 1.0     # partner of x2 column is x1 column
    return jnp.asarray(COS), jnp.asarray(SIN), jnp.asarray(P)


def _causal_mask_bias():
    row = np.arange(S)[:, None]
    col = np.arange(S)[None, :]
    return jnp.asarray(np.where(col <= row, 0.0, NEG).astype(np.float32))


# ---------------------------------- wrapper ----------------------------------------
def phi_mha_decoder_layer(x, params, consts):
    cosq, sinq, pq, cosk, sink, pk, mask = consts

    inputs = (
        x,
        params["ln_g"].reshape(1, D), params["ln_b"].reshape(1, D),
        params["wqkv"], params["bqkv"].reshape(1, QKV_DIM),
        cosq, sinq, pq, cosk, sink, pk, mask,
        params["wo"], params["bo"].reshape(1, D),
        params["wfc1"], params["bfc1"].reshape(1, I),
        params["wfc2"], params["bfc2"].reshape(1, D),
    )

    x_spec = pl.BlockSpec((1, S, D), lambda b: (b, 0, 0))
    const_specs = [pl.BlockSpec(a.shape, lambda b: (0, 0)) for a in inputs[1:]]

    matmul_flops = 2 * S * (D * QKV_DIM + (H * DH) ** 2 + (HKV * DH) ** 2
                            + H * DH * D + D * I + I * D)
    attn_flops = 2 * H * 2 * S * S * DH
    flops = B * (matmul_flops + attn_flops)
    transcendentals = B * (H * S * S + S * I + S)
    bytes_accessed = 4 * (sum(int(a.size) for a in inputs) + B * S * D)

    return pl.pallas_call(
        phi_layer_kernel,
        out_shape=jax.ShapeDtypeStruct((B, S, D), x.dtype),
        grid=(B,),
        in_specs=[x_spec] + const_specs,
        out_specs=pl.BlockSpec((1, S, D), lambda b: (b, 0, 0)),
        compiler_params=pltpu.CompilerParams(dimension_semantics=("parallel",)),
        cost_estimate=pl.CostEstimate(flops=flops,
                                      transcendentals=transcendentals,
                                      bytes_accessed=bytes_accessed),
    )(*inputs)


# ------------------------------ pure-JAX reference ---------------------------------
def reference(x, params):
    x2d = x.reshape(B * S, D)
    mean = x2d.mean(-1, keepdims=True)
    var = ((x2d - mean) ** 2).mean(-1, keepdims=True)
    hs = (x2d - mean) / jnp.sqrt(var + EPS) * params["ln_g"] + params["ln_b"]

    qkv = (hs @ params["wqkv"] + params["bqkv"]).reshape(B, S, QKV_DIM)
    q = qkv[..., :H * DH].reshape(B, S, H, DH)
    kv = qkv[..., H * DH:].reshape(B, S, 2, HKV, DH)

    pos = jnp.arange(S, dtype=jnp.float32)
    inv_freq = 1.0 / (ROPE_THETA ** (jnp.arange(0, ROT_DIM, 2, dtype=jnp.float32) / ROT_DIM))
    freqs = jnp.outer(pos, inv_freq)
    cos, sin = jnp.cos(freqs), jnp.sin(freqs)

    def rot(t):
        r, pas = t[..., :ROT_DIM], t[..., ROT_DIM:]
        x1, x2 = r[..., :HALF], r[..., HALF:]
        c = cos[None, :, None, :]
        s_ = sin[None, :, None, :]
        return jnp.concatenate([x1 * c - x2 * s_, x2 * c + x1 * s_, pas], axis=-1)

    q = rot(q)
    k = rot(kv[:, :, 0])
    v = kv[:, :, 1]
    k = jnp.repeat(k, REP, axis=2)
    v = jnp.repeat(v, REP, axis=2)

    qh, kh, vh = (t.transpose(0, 2, 1, 3) for t in (q, k, v))
    s = jnp.einsum('bhqd,bhkd->bhqk', qh, kh) * SCALE
    causal = jnp.tril(jnp.ones((S, S), bool))
    s = jnp.where(causal, s, -jnp.inf)
    p = jax.nn.softmax(s, axis=-1)
    ctx = jnp.einsum('bhqk,bhkd->bhqd', p, vh).transpose(0, 2, 1, 3).reshape(B * S, H * DH)

    attn = ctx @ params["wo"] + params["bo"]
    h1 = jax.nn.gelu(hs @ params["wfc1"] + params["bfc1"], approximate=True)
    mlp = h1 @ params["wfc2"] + params["bfc2"]
    return (attn + mlp + x2d).reshape(B, S, D)


# ------------------------------------- main -----------------------------------------
if __name__ == "__main__":
    key = jax.random.PRNGKey(0)
    ks = jax.random.split(key, 10)

    params = {
        "ln_g": jnp.ones((D,), jnp.float32),
        "ln_b": jnp.zeros((D,), jnp.float32),
        "wqkv": jax.random.normal(ks[0], (D, QKV_DIM), jnp.float32) * 0.05,
        "bqkv": jax.random.normal(ks[1], (QKV_DIM,), jnp.float32) * 0.02,
        "wo":   jax.random.normal(ks[2], (H * DH, D), jnp.float32) * 0.05,
        "bo":   jax.random.normal(ks[3], (D,), jnp.float32) * 0.02,
        "wfc1": jax.random.normal(ks[4], (D, I), jnp.float32) * 0.05,
        "bfc1": jax.random.normal(ks[5], (I,), jnp.float32) * 0.02,
        "wfc2": jax.random.normal(ks[6], (I, D), jnp.float32) * 0.05,
        "bfc2": jax.random.normal(ks[7], (D,), jnp.float32) * 0.02,
    }
    x = jax.random.normal(ks[8], (B, S, D), jnp.float32)

    cosq, sinq, pq = _rope_tables(H)
    cosk, sink, pk = _rope_tables(HKV)
    consts = (cosq, sinq, pq, cosk, sink, pk, _causal_mask_bias())

    fused = jax.jit(lambda xx: phi_mha_decoder_layer(xx, params, consts))
    out = jax.block_until_ready(fused(x))

    assert out.shape == (B, S, D)
    assert bool(jnp.all(jnp.isfinite(out)))

    ref = jax.block_until_ready(reference(x, params))
    max_err = float(jnp.max(jnp.abs(out - ref)))
    assert max_err < 2e-2, f"mismatch vs reference: {max_err}"

    print("KERNEL_OK")
</pallas_src>

<mosaic_0001>
module attributes {stable_mosaic.version = 11 : i64} {
  func.func @phi_layer_kernel(%arg0: i32, %arg1: memref<1x8x32xf32, #tpu.memory_space<vmem>>, %arg2: memref<1x32xf32, #tpu.memory_space<vmem>>, %arg3: memref<1x32xf32, #tpu.memory_space<vmem>>, %arg4: memref<32x64xf32, #tpu.memory_space<vmem>>, %arg5: memref<1x64xf32, #tpu.memory_space<vmem>>, %arg6: memref<8x32xf32, #tpu.memory_space<vmem>>, %arg7: memref<8x32xf32, #tpu.memory_space<vmem>>, %arg8: memref<32x32xf32, #tpu.memory_space<vmem>>, %arg9: memref<8x16xf32, #tpu.memory_space<vmem>>, %arg10: memref<8x16xf32, #tpu.memory_space<vmem>>, %arg11: memref<16x16xf32, #tpu.memory_space<vmem>>, %arg12: memref<8x8xf32, #tpu.memory_space<vmem>>, %arg13: memref<32x32xf32, #tpu.memory_space<vmem>>, %arg14: memref<1x32xf32, #tpu.memory_space<vmem>>, %arg15: memref<32x64xf32, #tpu.memory_space<vmem>>, %arg16: memref<1x64xf32, #tpu.memory_space<vmem>>, %arg17: memref<64x32xf32, #tpu.memory_space<vmem>>, %arg18: memref<1x32xf32, #tpu.memory_space<vmem>>, %arg19: memref<1x8x32xf32, #tpu.memory_space<vmem>>) attributes {dimension_semantics = [#tpu.dimension_semantics<parallel>], iteration_bounds = array<i64: 2>, scalar_prefetch = 0 : i64, scratch_operands = 0 : i64, tpu.core_type = #tpu.core_type<tc>, window_params = [{transform_indices = @transform_0, window_bounds = array<i64: 1, 8, 32>}, {pipeline_mode = #tpu.pipeline_mode<synchronous>, transform_indices = @transform_1, window_bounds = array<i64: 1, 32>}, {pipeline_mode = #tpu.pipeline_mode<synchronous>, transform_indices = @transform_2, window_bounds = array<i64: 1, 32>}, {pipeline_mode = #tpu.pipeline_mode<synchronous>, transform_indices = @transform_3, window_bounds = array<i64: 32, 64>}, {pipeline_mode = #tpu.pipeline_mode<synchronous>, transform_indices = @transform_4, window_bounds = array<i64: 1, 64>}, {pipeline_mode = #tpu.pipeline_mode<synchronous>, transform_indices = @transform_5, window_bounds = array<i64: 8, 32>}, {pipeline_mode = #tpu.pipeline_mode<synchronous>, transform_indices = @transform_6, window_bounds = array<i64: 8, 32>}, {pipeline_mode = #tpu.pipeline_mode<synchronous>, transform_indices = @transform_7, window_bounds = array<i64: 32, 32>}, {pipeline_mode = #tpu.pipeline_mode<synchronous>, transform_indices = @transform_8, window_bounds = array<i64: 8, 16>}, {pipeline_mode = #tpu.pipeline_mode<synchronous>, transform_indices = @transform_9, window_bounds = array<i64: 8, 16>}, {pipeline_mode = #tpu.pipeline_mode<synchronous>, transform_indices = @transform_10, window_bounds = array<i64: 16, 16>}, {pipeline_mode = #tpu.pipeline_mode<synchronous>, transform_indices = @transform_11, window_bounds = array<i64: 8, 8>}, {pipeline_mode = #tpu.pipeline_mode<synchronous>, transform_indices = @transform_12, window_bounds = array<i64: 32, 32>}, {pipeline_mode = #tpu.pipeline_mode<synchronous>, transform_indices = @transform_13, window_bounds = array<i64: 1, 32>}, {pipeline_mode = #tpu.pipeline_mode<synchronous>, transform_indices = @transform_14, window_bounds = array<i64: 32, 64>}, {pipeline_mode = #tpu.pipeline_mode<synchronous>, transform_indices = @transform_15, window_bounds = array<i64: 1, 64>}, {pipeline_mode = #tpu.pipeline_mode<synchronous>, transform_indices = @transform_16, window_bounds = array<i64: 64, 32>}, {pipeline_mode = #tpu.pipeline_mode<synchronous>, transform_indices = @transform_17, window_bounds = array<i64: 1, 32>}, {transform_indices = @transform_18, window_bounds = array<i64: 1, 8, 32>}]} {
    %c0 = arith.constant 0 : index
    %c0_0 = arith.constant 0 : index
    %c0_1 = arith.constant 0 : index
    %0 = vector.load %arg1[%c0, %c0_0, %c0_1] : memref<1x8x32xf32, #tpu.memory_space<vmem>>, vector<1x8x32xf32>
    %1 = vector.shape_cast %0 : vector<1x8x32xf32> to vector<8x32xf32>
    %cst = arith.constant dense<0.000000e+00> : vector<8xf32>
    %2 = vector.multi_reduction <add>, %1, %cst [1] : vector<8x32xf32> to vector<8xf32>
    %3 = vector.shape_cast %2 : vector<8xf32> to vector<8x1xf32>
    %cst_2 = arith.constant 3.200000e+01 : f32
    %4 = vector.broadcast %cst_2 : f32 to vector<8x1xf32>
    %5 = arith.divf %3, %4 : vector<8x1xf32>
    %6 = vector.broadcast %5 : vector<8x1xf32> to vector<8x32xf32>
    %7 = arith.subf %1, %6 : vector<8x32xf32>
    %8 = arith.mulf %7, %7 : vector<8x32xf32>
    %cst_3 = arith.constant dense<0.000000e+00> : vector<8xf32>
    %9 = vector.multi_reduction <add>, %8, %cst_3 [1] : vector<8x32xf32> to vector<8xf32>
    %10 = vector.shape_cast %9 : vector<8xf32> to vector<8x1xf32>
    %cst_4 = arith.constant 3.200000e+01 : f32
    %11 = vector.broadcast %cst_4 : f32 to vector<8x1xf32>
    %12 = arith.divf %10, %11 : vector<8x1xf32>
    %13 = vector.broadcast %5 : vector<8x1xf32> to vector<8x32xf32>
    %14 = arith.subf %1, %13 : vector<8x32xf32>
    %cst_5 = arith.constant 9.99999974E-6 : f32
    %15 = vector.broadcast %cst_5 : f32 to vector<8x1xf32>
    %16 = arith.addf %12, %15 : vector<8x1xf32>
    %17 = math.rsqrt %16 : vector<8x1xf32>
    %18 = vector.broadcast %17 : vector<8x1xf32> to vector<8x32xf32>
    %19 = arith.mulf %14, %18 : vector<8x32xf32>
    %c0_6 = arith.constant 0 : index
    %c0_7 = arith.constant 0 : index
    %20 = vector.load %arg2[%c0_6, %c0_7] : memref<1x32xf32, #tpu.memory_space<vmem>>, vector<1x32xf32>
    %21 = vector.broadcast %20 : vector<1x32xf32> to vector<8x32xf32>
    %22 = arith.mulf %19, %21 : vector<8x32xf32>
    %c0_8 = arith.constant 0 : index
    %c0_9 = arith.constant 0 : index
    %23 = vector.load %arg3[%c0_8, %c0_9] : memref<1x32xf32, #tpu.memory_space<vmem>>, vector<1x32xf32>
    %24 = vector.broadcast %23 : vector<1x32xf32> to vector<8x32xf32>
    %25 = arith.addf %22, %24 : vector<8x32xf32>
    %c0_10 = arith.constant 0 : index
    %c0_11 = arith.constant 0 : index
    %26 = vector.load %arg4[%c0_10, %c0_11] : memref<32x64xf32, #tpu.memory_space<vmem>>, vector<32x64xf32>
    %cst_12 = arith.constant dense<0.000000e+00> : vector<8x64xf32>
    %27 = tpu.matmul %25, %26, %cst_12 {dimension_numbers = #tpu.dot_dimension_numbers<[1], [0], [0], [1], [0, 0, 1, 1], [], []>} : vector<8x32xf32>, vector<32x64xf32>, vector<8x64xf32> -> vector<8x64xf32>
    %c0_13 = arith.constant 0 : index
    %c0_14 = arith.constant 0 : index
    %28 = vector.load %arg5[%c0_13, %c0_14] : memref<1x64xf32, #tpu.memory_space<vmem>>, vector<1x64xf32>
    %29 = vector.broadcast %28 : vector<1x64xf32> to vector<8x64xf32>
    %30 = arith.addf %27, %29 : vector<8x64xf32>
    %31 = vector.extract_strided_slice %30 {offsets = [0, 0], sizes = [8, 32], strides = [1, 1]} : vector<8x64xf32> to vector<8x32xf32>
    %32 = vector.extract_strided_slice %30 {offsets = [0, 32], sizes = [8, 16], strides = [1, 1]} : vector<8x64xf32> to vector<8x16xf32>
    %33 = vector.extract_strided_slice %30 {offsets = [0, 48], sizes = [8, 16], strides = [1, 1]} : vector<8x64xf32> to vector<8x16xf32>
    %c0_15 = arith.constant 0 : index
    %c0_16 = arith.constant 0 : index
    %34 = vector.load %arg6[%c0_15, %c0_16] : memref<8x32xf32, #tpu.memory_space<vmem>>, vector<8x32xf32>
    %35 = arith.mulf %31, %34 : vector<8x32xf32>
    %c0_17 = arith.constant 0 : index
    %c0_18 = arith.constant 0 : index
    %36 = vector.load %arg8[%c0_17, %c0_18] : memref<32x32xf32, #tpu.memory_space<vmem>>, vector<32x32xf32>
    %cst_19 = arith.constant dense<0.000000e+00> : vector<8x32xf32>
    %37 = tpu.matmul %31, %36, %cst_19 {dimension_numbers = #tpu.dot_dimension_numbers<[1], [0], [0], [1], [0, 0, 1, 1], [], []>} : vector<8x32xf32>, vector<32x32xf32>, vector<8x32xf32> -> vector<8x32xf32>
    %c0_20 = arith.constant 0 : index
    %c0_21 = arith.constant 0 : index
    %38 = vector.load %arg7[%c0_20, %c0_21] : memref<8x32xf32, #tpu.memory_space<vmem>>, vector<8x32xf32>
    %39 = arith.mulf %37, %38 : vector<8x32xf32>
    %40 = arith.addf %35, %39 : vector<8x32xf32>
    %c0_22 = arith.constant 0 : index
    %c0_23 = arith.constant 0 : index
    %41 = vector.load %arg9[%c0_22, %c0_23] : memref<8x16xf32, #tpu.memory_space<vmem>>, vector<8x16xf32>
    %42 = arith.mulf %32, %41 : vector<8x16xf32>
    %c0_24 = arith.constant 0 : index
    %c0_25 = arith.constant 0 : index
    %43 = vector.load %arg11[%c0_24, %c0_25] : memref<16x16xf32, #tpu.memory_space<vmem>>, vector<16x16xf32>
    %cst_26 = arith.constant dense<0.000000e+00> : vector<8x16xf32>
    %44 = tpu.matmul %32, %43, %cst_26 {dimension_numbers = #tpu.dot_dimension_numbers<[1], [0], [0], [1], [0, 0, 1, 1], [], []>} : vector<8x16xf32>, vector<16x16xf32>, vector<8x16xf32> -> vector<8x16xf32>
    %c0_27 = arith.constant 0 : index
    %c0_28 = arith.constant 0 : index
    %45 = vector.load %arg10[%c0_27, %c0_28] : memref<8x16xf32, #tpu.memory_space<vmem>>, vector<8x16xf32>
    %46 = arith.mulf %44, %45 : vector<8x16xf32>
    %47 = arith.addf %42, %46 : vector<8x16xf32>
    %c0_29 = arith.constant 0 : index
    %c0_30 = arith.constant 0 : index
    %48 = vector.load %arg12[%c0_29, %c0_30] : memref<8x8xf32, #tpu.memory_space<vmem>>, vector<8x8xf32>
    %49 = vector.extract_strided_slice %40 {offsets = [0, 0], sizes = [8, 8], strides = [1, 1]} : vector<8x32xf32> to vector<8x8xf32>
    %50 = vector.extract_strided_slice %47 {offsets = [0, 0], sizes = [8, 8], strides = [1, 1]} : vector<8x16xf32> to vector<8x8xf32>
    %51 = vector.extract_strided_slice %33 {offsets = [0, 0], sizes = [8, 8], strides = [1, 1]} : vector<8x16xf32> to vector<8x8xf32>
    %cst_31 = arith.constant dense<0.000000e+00> : vector<8x8xf32>
    %52 = tpu.matmul %49, %50, %cst_31 {dimension_numbers = #tpu.dot_dimension_numbers<[1], [1], [0], [0], [0, 0, 1, 0], [], []>} : vector<8x8xf32>, vector<8x8xf32>, vector<8x8xf32> -> vector<8x8xf32>
    %cst_32 = arith.constant 0.353553385 : f32
    %53 = vector.broadcast %cst_32 : f32 to vector<8x8xf32>
    %54 = arith.mulf %52, %53 : vector<8x8xf32>
    %55 = arith.addf %54, %48 : vector<8x8xf32>
    %cst_33 = arith.constant dense<0xFF800000> : vector<8xf32>
    %56 = vector.multi_reduction <maximumf>, %55, %cst_33 [1] : vector<8x8xf32> to vector<8xf32>
    %57 = vector.shape_cast %56 : vector<8xf32> to vector<8x1xf32>
    %58 = vector.broadcast %57 : vector<8x1xf32> to vector<8x8xf32>
    %59 = arith.subf %55, %58 : vector<8x8xf32>
    %60 = math.exp %59 : vector<8x8xf32>
    %cst_34 = arith.constant dense<0.000000e+00> : vector<8xf32>
    %61 = vector.multi_reduction <add>, %60, %cst_34 [1] : vector<8x8xf32> to vector<8xf32>
    %62 = vector.shape_cast %61 : vector<8xf32> to vector<8x1xf32>
    %63 = tpu.reciprocal %62 {approx = true} : vector<8x1xf32> -> vector<8x1xf32>
    %64 = vector.broadcast %63 : vector<8x1xf32> to vector<8x8xf32>
    %65 = arith.mulf %60, %64 : vector<8x8xf32>
    %cst_35 = arith.constant dense<0.000000e+00> : vector<8x8xf32>
    %66 = tpu.matmul %65, %51, %cst_35 {dimension_numbers = #tpu.dot_dimension_numbers<[1], [0], [0], [1], [0, 0, 1, 1], [], []>} : vector<8x8xf32>, vector<8x8xf32>, vector<8x8xf32> -> vector<8x8xf32>
    %67 = vector.extract_strided_slice %40 {offsets = [0, 8], sizes = [8, 8], strides = [1, 1]} : vector<8x32xf32> to vector<8x8xf32>
    %68 = vector.extract_strided_slice %47 {offsets = [0, 0], sizes = [8, 8], strides = [1, 1]} : vector<8x16xf32> to vector<8x8xf32>
    %69 = vector.extract_strided_slice %33 {offsets = [0, 0], sizes = [8, 8], strides = [1, 1]} : vector<8x16xf32> to vector<8x8xf32>
    %cst_36 = arith.constant dense<0.000000e+00> : vector<8x8xf32>
    %70 = tpu.matmul %67, %68, %cst_36 {dimension_numbers = #tpu.dot_dimension_numbers<[1], [1], [0], [0], [0, 0, 1, 0], [], []>} : vector<8x8xf32>, vector<8x8xf32>, vector<8x8xf32> -> vector<8x8xf32>
    %cst_37 = arith.constant 0.353553385 : f32
    %71 = vector.broadcast %cst_37 : f32 to vector<8x8xf32>
    %72 = arith.mulf %70, %71 : vector<8x8xf32>
    %73 = arith.addf %72, %48 : vector<8x8xf32>
    %cst_38 = arith.constant dense<0xFF800000> : vector<8xf32>
    %74 = vector.multi_reduction <maximumf>, %73, %cst_38 [1] : vector<8x8xf32> to vector<8xf32>
    %75 = vector.shape_cast %74 : vector<8xf32> to vector<8x1xf32>
    %76 = vector.broadcast %75 : vector<8x1xf32> to vector<8x8xf32>
    %77 = arith.subf %73, %76 : vector<8x8xf32>
    %78 = math.exp %77 : vector<8x8xf32>
    %cst_39 = arith.constant dense<0.000000e+00> : vector<8xf32>
    %79 = vector.multi_reduction <add>, %78, %cst_39 [1] : vector<8x8xf32> to vector<8xf32>
    %80 = vector.shape_cast %79 : vector<8xf32> to vector<8x1xf32>
    %81 = tpu.reciprocal %80 {approx = true} : vector<8x1xf32> -> vector<8x1xf32>
    %82 = vector.broadcast %81 : vector<8x1xf32> to vector<8x8xf32>
    %83 = arith.mulf %78, %82 : vector<8x8xf32>
    %cst_40 = arith.constant dense<0.000000e+00> : vector<8x8xf32>
    %84 = tpu.matmul %83, %69, %cst_40 {dimension_numbers = #tpu.dot_dimension_numbers<[1], [0], [0], [1], [0, 0, 1, 1], [], []>} : vector<8x8xf32>, vector<8x8xf32>, vector<8x8xf32> -> vector<8x8xf32>
    %85 = vector.extract_strided_slice %40 {offsets = [0, 16], sizes = [8, 8], strides = [1, 1]} : vector<8x32xf32> to vector<8x8xf32>
    %86 = vector.extract_strided_slice %47 {offsets = [0, 8], sizes = [8, 8], strides = [1, 1]} : vector<8x16xf32> to vector<8x8xf32>
    %87 = vector.extract_strided_slice %33 {offsets = [0, 8], sizes = [8, 8], strides = [1, 1]} : vector<8x16xf32> to vector<8x8xf32>
    %cst_41 = arith.constant dense<0.000000e+00> : vector<8x8xf32>
    %88 = tpu.matmul %85, %86, %cst_41 {dimension_numbers = #tpu.dot_dimension_numbers<[1], [1], [0], [0], [0, 0, 1, 0], [], []>} : vector<8x8xf32>, vector<8x8xf32>, vector<8x8xf32> -> vector<8x8xf32>
    %cst_42 = arith.constant 0.353553385 : f32
    %89 = vector.broadcast %cst_42 : f32 to vector<8x8xf32>
    %90 = arith.mulf %88, %89 : vector<8x8xf32>
    %91 = arith.addf %90, %48 : vector<8x8xf32>
    %cst_43 = arith.constant dense<0xFF800000> : vector<8xf32>
    %92 = vector.multi_reduction <maximumf>, %91, %cst_43 [1] : vector<8x8xf32> to vector<8xf32>
    %93 = vector.shape_cast %92 : vector<8xf32> to vector<8x1xf32>
    %94 = vector.broadcast %93 : vector<8x1xf32> to vector<8x8xf32>
    %95 = arith.subf %91, %94 : vector<8x8xf32>
    %96 = math.exp %95 : vector<8x8xf32>
    %cst_44 = arith.constant dense<0.000000e+00> : vector<8xf32>
    %97 = vector.multi_reduction <add>, %96, %cst_44 [1] : vector<8x8xf32> to vector<8xf32>
    %98 = vector.shape_cast %97 : vector<8xf32> to vector<8x1xf32>
    %99 = tpu.reciprocal %98 {approx = true} : vector<8x1xf32> -> vector<8x1xf32>
    %100 = vector.broadcast %99 : vector<8x1xf32> to vector<8x8xf32>
    %101 = arith.mulf %96, %100 : vector<8x8xf32>
    %cst_45 = arith.constant dense<0.000000e+00> : vector<8x8xf32>
    %102 = tpu.matmul %101, %87, %cst_45 {dimension_numbers = #tpu.dot_dimension_numbers<[1], [0], [0], [1], [0, 0, 1, 1], [], []>} : vector<8x8xf32>, vector<8x8xf32>, vector<8x8xf32> -> vector<8x8xf32>
    %103 = vector.extract_strided_slice %40 {offsets = [0, 24], sizes = [8, 8], strides = [1, 1]} : vector<8x32xf32> to vector<8x8xf32>
    %104 = vector.extract_strided_slice %47 {offsets = [0, 8], sizes = [8, 8], strides = [1, 1]} : vector<8x16xf32> to vector<8x8xf32>
    %105 = vector.extract_strided_slice %33 {offsets = [0, 8], sizes = [8, 8], strides = [1, 1]} : vector<8x16xf32> to vector<8x8xf32>
    %cst_46 = arith.constant dense<0.000000e+00> : vector<8x8xf32>
    %106 = tpu.matmul %103, %104, %cst_46 {dimension_numbers = #tpu.dot_dimension_numbers<[1], [1], [0], [0], [0, 0, 1, 0], [], []>} : vector<8x8xf32>, vector<8x8xf32>, vector<8x8xf32> -> vector<8x8xf32>
    %cst_47 = arith.constant 0.353553385 : f32
    %107 = vector.broadcast %cst_47 : f32 to vector<8x8xf32>
    %108 = arith.mulf %106, %107 : vector<8x8xf32>
    %109 = arith.addf %108, %48 : vector<8x8xf32>
    %cst_48 = arith.constant dense<0xFF800000> : vector<8xf32>
    %110 = vector.multi_reduction <maximumf>, %109, %cst_48 [1] : vector<8x8xf32> to vector<8xf32>
    %111 = vector.shape_cast %110 : vector<8xf32> to vector<8x1xf32>
    %112 = vector.broadcast %111 : vector<8x1xf32> to vector<8x8xf32>
    %113 = arith.subf %109, %112 : vector<8x8xf32>
    %114 = math.exp %113 : vector<8x8xf32>
    %cst_49 = arith.constant dense<0.000000e+00> : vector<8xf32>
    %115 = vector.multi_reduction <add>, %114, %cst_49 [1] : vector<8x8xf32> to vector<8xf32>
    %116 = vector.shape_cast %115 : vector<8xf32> to vector<8x1xf32>
    %117 = tpu.reciprocal %116 {approx = true} : vector<8x1xf32> -> vector<8x1xf32>
    %118 = vector.broadcast %117 : vector<8x1xf32> to vector<8x8xf32>
    %119 = arith.mulf %114, %118 : vector<8x8xf32>
    %cst_50 = arith.constant dense<0.000000e+00> : vector<8x8xf32>
    %120 = tpu.matmul %119, %105, %cst_50 {dimension_numbers = #tpu.dot_dimension_numbers<[1], [0], [0], [1], [0, 0, 1, 1], [], []>} : vector<8x8xf32>, vector<8x8xf32>, vector<8x8xf32> -> vector<8x8xf32>
    %121 = tpu.concatenate %66, %84, %102, %120 in 1 : vector<8x8xf32>, vector<8x8xf32>, vector<8x8xf32>, vector<8x8xf32> -> vector<8x32xf32>
    %c0_51 = arith.constant 0 : index
    %c0_52 = arith.constant 0 : index
    %122 = vector.load %arg13[%c0_51, %c0_52] : memref<32x32xf32, #tpu.memory_space<vmem>>, vector<32x32xf32>
    %cst_53 = arith.constant dense<0.000000e+00> : vector<8x32xf32>
    %123 = tpu.matmul %121, %122, %cst_53 {dimension_numbers = #tpu.dot_dimension_numbers<[1], [0], [0], [1], [0, 0, 1, 1], [], []>} : vector<8x32xf32>, vector<32x32xf32>, vector<8x32xf32> -> vector<8x32xf32>
    %c0_54 = arith.constant 0 : index
    %c0_55 = arith.constant 0 : index
    %124 = vector.load %arg14[%c0_54, %c0_55] : memref<1x32xf32, #tpu.memory_space<vmem>>, vector<1x32xf32>
    %125 = vector.broadcast %124 : vector<1x32xf32> to vector<8x32xf32>
    %126 = arith.addf %123, %125 : vector<8x32xf32>
    %c0_56 = arith.constant 0 : index
    %c0_57 = arith.constant 0 : index
    %127 = vector.load %arg15[%c0_56, %c0_57] : memref<32x64xf32, #tpu.memory_space<vmem>>, vector<32x64xf32>
    %cst_58 = arith.constant dense<0.000000e+00> : vector<8x64xf32>
    %128 = tpu.matmul %25, %127, %cst_58 {dimension_numbers = #tpu.dot_dimension_numbers<[1], [0], [0], [1], [0, 0, 1, 1], [], []>} : vector<8x32xf32>, vector<32x64xf32>, vector<8x64xf32> -> vector<8x64xf32>
    %c0_59 = arith.constant 0 : index
    %c0_60 = arith.constant 0 : index
    %129 = vector.load %arg16[%c0_59, %c0_60] : memref<1x64xf32, #tpu.memory_space<vmem>>, vector<1x64xf32>
    %130 = vector.broadcast %129 : vector<1x64xf32> to vector<8x64xf32>
    %131 = arith.addf %128, %130 : vector<8x64xf32>
    %132 = arith.mulf %131, %131 : vector<8x64xf32>
    %133 = arith.mulf %131, %132 : vector<8x64xf32>
    %cst_61 = arith.constant 4.471500e-02 : f32
    %134 = vector.broadcast %cst_61 : f32 to vector<8x64xf32>
    %135 = arith.mulf %134, %133 : vector<8x64xf32>
    %136 = arith.addf %131, %135 : vector<8x64xf32>
    %cst_62 = arith.constant 0.797884583 : f32
    %137 = vector.broadcast %cst_62 : f32 to vector<8x64xf32>
    %138 = arith.mulf %137, %136 : vector<8x64xf32>
    %139 = math.tanh %138 : vector<8x64xf32>
    %cst_63 = arith.constant 1.000000e+00 : f32
    %140 = vector.broadcast %cst_63 : f32 to vector<8x64xf32>
    %141 = arith.addf %140, %139 : vector<8x64xf32>
    %cst_64 = arith.constant 5.000000e-01 : f32
    %142 = vector.broadcast %cst_64 : f32 to vector<8x64xf32>
    %143 = arith.mulf %142, %141 : vector<8x64xf32>
    %144 = arith.mulf %131, %143 : vector<8x64xf32>
    %c0_65 = arith.constant 0 : index
    %c0_66 = arith.constant 0 : index
    %145 = vector.load %arg17[%c0_65, %c0_66] : memref<64x32xf32, #tpu.memory_space<vmem>>, vector<64x32xf32>
    %cst_67 = arith.constant dense<0.000000e+00> : vector<8x32xf32>
    %146 = tpu.matmul %144, %145, %cst_67 {dimension_numbers = #tpu.dot_dimension_numbers<[1], [0], [0], [1], [0, 0, 1, 1], [], []>} : vector<8x64xf32>, vector<64x32xf32>, vector<8x32xf32> -> vector<8x32xf32>
    %c0_68 = arith.constant 0 : index
    %c0_69 = arith.constant 0 : index
    %147 = vector.load %arg18[%c0_68, %c0_69] : memref<1x32xf32, #tpu.memory_space<vmem>>, vector<1x32xf32>
    %148 = vector.broadcast %147 : vector<1x32xf32> to vector<8x32xf32>
    %149 = arith.addf %146, %148 : vector<8x32xf32>
    %150 = arith.addf %126, %149 : vector<8x32xf32>
    %151 = arith.addf %150, %1 : vector<8x32xf32>
    %c0_70 = arith.constant 0 : index
    %c0_71 = arith.constant 0 : index
    %c0_72 = arith.constant 0 : index
    %152 = vector.load %arg19[%c0_70, %c0_71, %c0_72] : memref<1x8x32xf32, #tpu.memory_space<vmem>>, vector<1x8x32xf32>
    %153 = vector.shape_cast %152 : vector<1x8x32xf32> to vector<8x32xf32>
    %154 = vector.shape_cast %151 : vector<8x32xf32> to vector<1x8x32xf32>
    tpu.vector_store %arg19[%c0_70, %c0_71, %c0_72], %154 {strides = array<i32>} : memref<1x8x32xf32, #tpu.memory_space<vmem>>, vector<1x8x32xf32>,
    return
  }
  func.func @transform_0(%arg0: i32) -> (i32, i32, i32) {
    %c0_i32 = arith.constant 0 : i32
    %c0_i32_0 = arith.constant 0 : i32
    %c0_i32_1 = arith.constant 0 : i32
    return %arg0, %c0_i32, %c0_i32_0 : i32, i32, i32
  }
  func.func @transform_1(%arg0: i32) -> (i32, i32) {
    %c0_i32 = arith.constant 0 : i32
    %c0_i32_0 = arith.constant 0 : i32
    %c0_i32_1 = arith.constant 0 : i32
    return %c0_i32, %c0_i32_0 : i32, i32
  }
  func.func @transform_2(%arg0: i32) -> (i32, i32) {
    %c0_i32 = arith.constant 0 : i32
    %c0_i32_0 = arith.constant 0 : i32
    %c0_i32_1 = arith.constant 0 : i32
    return %c0_i32, %c0_i32_0 : i32, i32
  }
  func.func @transform_3(%arg0: i32) -> (i32, i32) {
    %c0_i32 = arith.constant 0 : i32
    %c0_i32_0 = arith.constant 0 : i32
    %c0_i32_1 = arith.constant 0 : i32
    return %c0_i32, %c0_i32_0 : i32, i32
  }
  func.func @transform_4(%arg0: i32) -> (i32, i32) {
    %c0_i32 = arith.constant 0 : i32
    %c0_i32_0 = arith.constant 0 : i32
    %c0_i32_1 = arith.constant 0 : i32
    return %c0_i32, %c0_i32_0 : i32, i32
  }
  func.func @transform_5(%arg0: i32) -> (i32, i32) {
    %c0_i32 = arith.constant 0 : i32
    %c0_i32_0 = arith.constant 0 : i32
    %c0_i32_1 = arith.constant 0 : i32
    return %c0_i32, %c0_i32_0 : i32, i32
  }
  func.func @transform_6(%arg0: i32) -> (i32, i32) {
    %c0_i32 = arith.constant 0 : i32
    %c0_i32_0 = arith.constant 0 : i32
    %c0_i32_1 = arith.constant 0 : i32
    return %c0_i32, %c0_i32_0 : i32, i32
  }
  func.func @transform_7(%arg0: i32) -> (i32, i32) {
    %c0_i32 = arith.constant 0 : i32
    %c0_i32_0 = arith.constant 0 : i32
    %c0_i32_1 = arith.constant 0 : i32
    return %c0_i32, %c0_i32_0 : i32, i32
  }
  func.func @transform_8(%arg0: i32) -> (i32, i32) {
    %c0_i32 = arith.constant 0 : i32
    %c0_i32_0 = arith.constant 0 : i32
    %c0_i32_1 = arith.constant 0 : i32
    return %c0_i32, %c0_i32_0 : i32, i32
  }
  func.func @transform_9(%arg0: i32) -> (i32, i32) {
    %c0_i32 = arith.constant 0 : i32
    %c0_i32_0 = arith.constant 0 : i32
    %c0_i32_1 = arith.constant 0 : i32
    return %c0_i32, %c0_i32_0 : i32, i32
  }
  func.func @transform_10(%arg0: i32) -> (i32, i32) {
    %c0_i32 = arith.constant 0 : i32
    %c0_i32_0 = arith.constant 0 : i32
    %c0_i32_1 = arith.constant 0 : i32
    return %c0_i32, %c0_i32_0 : i32, i32
  }
  func.func @transform_11(%arg0: i32) -> (i32, i32) {
    %c0_i32 = arith.constant 0 : i32
    %c0_i32_0 = arith.constant 0 : i32
    %c0_i32_1 = arith.constant 0 : i32
    return %c0_i32, %c0_i32_0 : i32, i32
  }
  func.func @transform_12(%arg0: i32) -> (i32, i32) {
    %c0_i32 = arith.constant 0 : i32
    %c0_i32_0 = arith.constant 0 : i32
    %c0_i32_1 = arith.constant 0 : i32
    return %c0_i32, %c0_i32_0 : i32, i32
  }
  func.func @transform_13(%arg0: i32) -> (i32, i32) {
    %c0_i32 = arith.constant 0 : i32
    %c0_i32_0 = arith.constant 0 : i32
    %c0_i32_1 = arith.constant 0 : i32
    return %c0_i32, %c0_i32_0 : i32, i32
  }
  func.func @transform_14(%arg0: i32) -> (i32, i32) {
    %c0_i32 = arith.constant 0 : i32
    %c0_i32_0 = arith.constant 0 : i32
    %c0_i32_1 = arith.constant 0 : i32
    return %c0_i32, %c0_i32_0 : i32, i32
  }
  func.func @transform_15(%arg0: i32) -> (i32, i32) {
    %c0_i32 = arith.constant 0 : i32
    %c0_i32_0 = arith.constant 0 : i32
    %c0_i32_1 = arith.constant 0 : i32
    return %c0_i32, %c0_i32_0 : i32, i32
  }
  func.func @transform_16(%arg0: i32) -> (i32, i32) {
    %c0_i32 = arith.constant 0 : i32
    %c0_i32_0 = arith.constant 0 : i32
    %c0_i32_1 = arith.constant 0 : i32
    return %c0_i32, %c0_i32_0 : i32, i32
  }
  func.func @transform_17(%arg0: i32) -> (i32, i32) {
    %c0_i32 = arith.constant 0 : i32
    %c0_i32_0 = arith.constant 0 : i32
    %c0_i32_1 = arith.constant 0 : i32
    return %c0_i32, %c0_i32_0 : i32, i32
  }
  func.func @transform_18(%arg0: i32) -> (i32, i32, i32) {
    %c0_i32 = arith.constant 0 : i32
    %c0_i32_0 = arith.constant 0 : i32
    %c0_i32_1 = arith.constant 0 : i32
    return %arg0, %c0_i32, %c0_i32_0 : i32, i32, i32
  }
}

</mosaic_0001>

<bundles_post_ra>
// kernel: _lambda_.1
= control target key start
LH: loop header
LB: loop body
LE: loop exit
PB: predicated region body
PF: predicated region fallthrough
CT: control target
= control target key end

     0   :  { %s3548_s0 = inlined_call_operand.hbm [shape: f32[2,8,32], index: 0, kind: input, shape index: {}]   ;;  %s3549_s1 = inlined_call_operand.vmem [shape: f32[1,32], index: 1, kind: input, shape index: {}]   ;;  %s3550_s2 = inlined_call_operand.vmem [shape: f32[1,32], index: 2, kind: input, shape index: {}]   ;;  %s3551_s3 = inlined_call_operand.hbm [shape: f32[32,64], index: 3, kind: input, shape index: {}]   ;;  %s3552_s4 = inlined_call_operand.vmem [shape: f32[1,64], index: 4, kind: input, shape index: {}]   ;;  %s3553_s5 = inlined_call_operand.hbm [shape: f32[8,32], index: 5, kind: input, shape index: {}]   ;;  %s3554_s6 = inlined_call_operand.hbm [shape: f32[8,32], index: 6, kind: input, shape index: {}]   ;;  %s3555_s7 = inlined_call_operand.hbm [shape: f32[32,32], index: 7, kind: input, shape index: {}]   ;;  %s3556_s8 = inlined_call_operand.hbm [shape: f32[8,16], index: 8, kind: input, shape index: {}]   ;;  %s3557_s9 = inlined_call_operand.hbm [shape: f32[8,16], index: 9, kind: input, shape index: {}]   ;;  %s3558_s10 = inlined_call_operand.vmem [shape: f32[16,16], index: 10, kind: input, shape index: {}]   ;;  %s3559_s11 = inlined_call_operand.hbm [shape: f32[8,8], index: 11, kind: input, shape index: {}]   ;;  %s3560_s12 = inlined_call_operand.hbm [shape: f32[32,32], index: 12, kind: input, shape index: {}]   ;;  %s3561_s13 = inlined_call_operand.vmem [shape: f32[1,32], index: 13, kind: input, shape index: {}]   ;;  %s3562_s14 = inlined_call_operand.vmem [shape: f32[32,64], index: 14, kind: input, shape index: {}]   ;;  %s3563_s15 = inlined_call_operand.vmem [shape: f32[1,64], index: 15, kind: input, shape index: {}]   ;;  %s3564_s16 = inlined_call_operand.hbm [shape: f32[64,32], index: 16, kind: input, shape index: {}]   ;;  %s3565_s17 = inlined_call_operand.vmem [shape: f32[1,32], index: 17, kind: input, shape index: {}]   ;;  %s3566_s18 = inlined_call_operand.hbm [shape: f32[2,8,32], index: 18, kind: output, shape index: {}]  }
   0x1   :  { %3578 = sst [smem:[#allocation27_spill]] %s3548_s0 }
   0x2   :  { %3579 = sst [smem:[#allocation28_spill]] %s3549_s1 }
   0x3   :  { %3580 = sst [smem:[#allocation29_spill]] %s3550_s2 }
   0x4   :  { %3581 = sst [smem:[#allocation30_spill]] %s3551_s3 }
   0x5   :  { %3582 = sst [smem:[#allocation31_spill]] %s3552_s4 }
   0x6   :  { %3583 = sst [smem:[#allocation32_spill]] %s3553_s5 }
   0x7   :  { %3584 = sst [smem:[#allocation33_spill]] %s3554_s6 }
   0x8   :  { %3585 = sst [smem:[#allocation34_spill]] %s3558_s10 }
   0x9   :  { %3586 = sst [smem:[#allocation35_spill]] %s3561_s13 }
   0xa   :  { %3587 = sst [smem:[#allocation36_spill]] %s3562_s14 }
   0xb   :  { %3588 = sst [smem:[#allocation37_spill]] %s3563_s15 }
   0xc   :  { %3589 = sst [smem:[#allocation38_spill]] %s3565_s17 }
   0xd   :  { %3590 = sst [smem:[#allocation39_spill]] %s3566_s18 }
   0xe   :  { %23 = vsyncpa [#allocation3], 0 }
   0xf   :  { %25 = vsyncpa [#allocation3 + $0x1], 0 }
  0x10   :  { %26 = vsyncpa [#allocation6], 0 }
  0x11   :  { %27 = vsyncpa [#allocation9], 0 }
  0x12   :  { %28 = vsyncpa [#allocation12], 0 }
  0x13   :  { %29 = vsyncpa [#allocation15], 0 }
  0x14   :  { %30 = vsyncpa [#allocation18], 0 }
  0x15   :  { %31 = vsyncpa [#allocation4], 0 }
  0x16   :  { %33 = vsyncpa [#allocation4 + $0x1], 0  ;;  %s3024_s27 = smov 0   ;;  %s3026_s28 = smov 0  }
  0x17   :  { %s3028_s29 = smov 0   ;;  %s3030_s30 = smov 0  }
  0x18 LB: > { %s2902_s0 = smov [#allocation5]   ;;  %s3045_s1 = sadd.s32 4294967295, %s2900_s30   ;;  %s2900_s30 = sphi %s3030_s30, %s3631_s30   ;;  %s2896_s29 = sphi %s3028_s29, %s3630_s29   ;;  %s2892_s28 = sphi %s3026_s28, %s3629_s28   ;;  %s2888_s27 = sphi %s3024_s27, %s3628_s27  }
  0x19   : > { %s471_s19 = sshll.u32 %s2902_s0, 4  ;;  %p2109_p0 = scmp.ge.s32.totalorder %s2900_s30, 1  ;;  %s3050_s19 = int_to_ptr.vmem [resolvable:$true] %s471_s19 }
  0x1a   : > { %p3573_p1 = scmp.eq.s32.totalorder %s3045_s1, 0  ;;  %p453_p2 = scmp.lt.s32.totalorder %s2900_s30, 3 }
  0x1b   : > { %s2903_s21 = smov [#allocation8]   ;;  %s2904_s23 = smov [#allocation11]  }
  0x1c   : > { %p3052_p3 = pnand %p2109_p0, %p453_p2  ;;  %s499_s22 = sshll.u32 %s2903_s21, 4  ;;  %s3065_s22 = int_to_ptr.vmem [resolvable:$true] %s499_s22 }
  0x1d   : > { %s523_s24 = sshll.u32 %s2904_s23, 4  ;;  %s3593_s3 = sld [smem:[#allocation30_spill]]  ;;  %s3067_s24 = int_to_ptr.vmem [resolvable:$true] %s523_s24 }
  0x1e   : > { %s3591_s20 = scalar_select %p3052_p3, 1, 0 }
  0x1f   : > { %p2399_p5 = pneg %p3052_p3 }
  0x21   : > { %p3061_p6 = pnand %p2399_p5, %p3573_p1 }
  0x23   : > { %s2532_s0 = scalar_lea.hbm %s3593_s3, 512  ;;  %p3077_p8 = pneg %p3061_p6 }
  0x24   : > { %p2533_p7 = scmp.ne.s32.totalorder %s3593_s3, %s2532_s0  ;;  %p2539_p11 = scmp.lt.u32.totalorder %s2532_s0, %s3593_s3 }
  0x26   : > { %p2535_p9 = pnand %p3077_p8, %p2533_p7 }
  0x28   : > { %p2536_p10 = pneg %p2535_p9 }
  0x2a   : > { %p2541_p12 = pnand %p2539_p11, %p2536_p10 }
  0x2c   : > { %2544 = shalt.err (!%p2541_p12)
}
  0x2d   : > { %s2545_s17 = scalar_lea.vmem %s3050_s19, 512  ;;  %p2553_p5 = scmp.lt.s32.totalorder %s3050_s19, %s3050_s19 }
  0x2e   : > { %p2546_p13 = scmp.ne.s32.totalorder %s3050_s19, %s2545_s17  ;;  %p2554_p4 = scmp.lt.s32.totalorder %s2545_s17, %s2545_s17 }
  0x30   : > { %p2548_p0 = pnand %p2546_p13, %p3077_p8  ;;  %p2555_p7 = por %p2554_p4, %p2553_p5 }
  0x32   : > { %p2549_p2 = pneg %p2548_p0 }
  0x34   : > { %p2556_p9 = pnand %p2555_p7, %p2549_p2 }
  0x36   : > { %2559 = shalt.err (!%p2556_p9)
}
  0x37   : > { %s3571_s18 = smov 128   ;;  %s3575_s13 = smov 8  }
  0x38   : > { %2402 = dma.hbm_to_vmem [thread:$0]  (!%p3061_p6), %s3593_s3, 512, %s3050_s19, [#allocation6], %s3571_s18, %s3571_s18, %s3575_s13  }
  0x39   : > { %s3595_s6 = sld [smem:[#allocation33_spill]] }
  0x3f   : > { %s2560_s17 = scalar_lea.hbm %s3595_s6, 128 }
  0x40   : > { %p2561_p4 = scmp.ne.s32.totalorder %s3595_s6, %s2560_s17  ;;  %p2567_p12 = scmp.lt.u32.totalorder %s2560_s17, %s3595_s6 }
  0x42   : > { %p2563_p10 = pnand %p2561_p4, %p3077_p8 }
  0x44   : > { %p2564_p11 = pneg %p2563_p10 }
  0x46   : > { %p2569_p13 = pnand %p2567_p12, %p2564_p11 }
  0x48   : > { %2572 = shalt.err (!%p2569_p13)
}
  0x49   : > { %s2573_s19 = scalar_lea.vmem %s3065_s22, 128  ;;  %p2581_p7 = scmp.lt.s32.totalorder %s3065_s22, %s3065_s22 }
  0x4a   : > { %p2574_p0 = scmp.ne.s32.totalorder %s3065_s22, %s2573_s19  ;;  %p2582_p9 = scmp.lt.s32.totalorder %s2573_s19, %s2573_s19 }
  0x4c   : > { %p2576_p2 = pnand %p2574_p0, %p3077_p8  ;;  %p2583_p4 = por %p2582_p9, %p2581_p7 }
  0x4e   : > { %p2577_p5 = pneg %p2576_p2 }
  0x50   : > { %p2584_p10 = pnand %p2583_p4, %p2577_p5 }
  0x52   : > { %2587 = shalt.err (!%p2584_p10)
}
  0x53   : > { %2408 = dma.hbm_to_vmem [thread:$0]  (!%p3061_p6), %s3595_s6, 128, %s3065_s22, [#allocation9]  }
  0x54   : > { %s2588_s25 = scalar_lea.hbm %s3556_s8, 128 }
  0x55   : > { %p2589_p11 = scmp.ne.s32.totalorder %s3556_s8, %s2588_s25  ;;  %p2595_p0 = scmp.lt.u32.totalorder %s2588_s25, %s3556_s8 }
  0x57   : > { %p2591_p12 = pnand %p2589_p11, %p3077_p8 }
  0x59   : > { %p2592_p13 = pneg %p2591_p12 }
  0x5b   : > { %p2597_p2 = pnand %p2595_p0, %p2592_p13 }
  0x5d   : > { %2600 = shalt.err (!%p2597_p2)
}
  0x5e   : > { %s2601_s22 = scalar_lea.vmem %s3067_s24, 128  ;;  %p2609_p4 = scmp.lt.s32.totalorder %s3067_s24, %s3067_s24 }
  0x5f   : > { %p2602_p5 = scmp.ne.s32.totalorder %s3067_s24, %s2601_s22  ;;  %p2610_p10 = scmp.lt.s32.totalorder %s2601_s22, %s2601_s22 }
  0x61   : > { %p2604_p7 = pnand %p2602_p5, %p3077_p8  ;;  %p2611_p11 = por %p2610_p10, %p2609_p4 }
  0x63   : > { %p2605_p9 = pneg %p2604_p7 }
  0x65   : > { %p2612_p12 = pnand %p2611_p11, %p2605_p9 }
  0x67   : > { %2615 = shalt.err (!%p2612_p12)
}
  0x68   : > { %2414 = dma.hbm_to_vmem [thread:$0]  (!%p3061_p6), %s3556_s8, 128, %s3067_s24, [#allocation12]  }
  0x69   : > { %s2907_s10 = smov [#allocation14]   ;;  %s2908_s15 = smov [#allocation7]  }
  0x6a   : > { %s548_s14 = sshll.u32 %s2907_s10, 4  ;;  %s488_s25 = sshll.u32 %s2908_s15, 4  ;;  %s549_s14 = int_to_ptr.vmem [resolvable:$true] %s548_s14  ;;  %s489_s25 = int_to_ptr.vmem [resolvable:$true] %s488_s25 }
  0x6b   : > { %s2616_s23 = scalar_lea.hbm %s3559_s11, 128 }
  0x6c   : > { %p2617_p13 = scmp.ne.s32.totalorder %s3559_s11, %s2616_s23  ;;  %p2623_p5 = scmp.lt.u32.totalorder %s2616_s23, %s3559_s11 }
  0x6e   : > { %p2619_p0 = pnand %p2617_p13, %p3077_p8 }
  0x70   : > { %p2620_p2 = pneg %p2619_p0 }
  0x72   : > { %p2625_p7 = pnand %p2623_p5, %p2620_p2 }
  0x74   : > { %2628 = shalt.err (!%p2625_p7)
}
  0x75   : > { %s2629_s24 = scalar_lea.vmem %s549_s14, 128  ;;  %p2637_p11 = scmp.lt.s32.totalorder %s549_s14, %s549_s14 }
  0x76   : > { %p2630_p9 = scmp.ne.s32.totalorder %s549_s14, %s2629_s24  ;;  %p2638_p12 = scmp.lt.s32.totalorder %s2629_s24, %s2629_s24 }
  0x78   : > { %p2632_p4 = pnand %p2630_p9, %p3077_p8  ;;  %p2639_p1 = por %p2638_p12, %p2637_p11 }
  0x7a   : > { %p2633_p10 = pneg %p2632_p4 }
  0x7c   : > { %p2640_p3 = pnand %p2639_p1, %p2633_p10 }
  0x7e   : > { %2643 = shalt.err (!%p2640_p3)
}
  0x7f   : > { %2420 = dma.hbm_to_vmem [thread:$0]  (!%p3061_p6), %s3559_s11, 128, %s549_s14, [#allocation15]  }
  0x80   : > { %s3596_s5 = sld [smem:[#allocation32_spill]] }
  0x86   : > { %s2644_s26 = scalar_lea.hbm %s3596_s5, 128 }
  0x87   : > { %p2645_p13 = scmp.ne.s32.totalorder %s3596_s5, %s2644_s26  ;;  %p2651_p3 = scmp.lt.u32.totalorder %s2644_s26, %s3596_s5 }
  0x89   : > { %p2647_p0 = pnand %p2645_p13, %p3077_p8 }
  0x8b   : > { %p2648_p1 = pneg %p2647_p0 }
  0x8d   : > { %p2653_p2 = pnand %p2651_p3, %p2648_p1 }
  0x8f   : > { %2656 = shalt.err (!%p2653_p2)
}
  0x90   : > { %s2657_s19 = scalar_lea.vmem %s489_s25, 128  ;;  %p2665_p4 = scmp.lt.s32.totalorder %s489_s25, %s489_s25 }
  0x91   : > { %p2658_p5 = scmp.ne.s32.totalorder %s489_s25, %s2657_s19  ;;  %p2666_p10 = scmp.lt.s32.totalorder %s2657_s19, %s2657_s19 }
  0x93   : > { %p2660_p7 = pnand %p2658_p5, %p3077_p8  ;;  %p2667_p11 = por %p2666_p10, %p2665_p4 }
  0x95   : > { %p2661_p9 = pneg %p2660_p7 }
  0x97   : > { %p2668_p12 = pnand %p2667_p11, %p2661_p9 }
  0x99   : > { %2671 = shalt.err (!%p2668_p12)
}
  0x9a   : > { %2405 = dma.hbm_to_vmem [thread:$0]  (!%p3061_p6), %s3596_s5, 128, %s489_s25, [#allocation6]  }
  0x9b   : > { %s2909_s4 = smov [#allocation10]   ;;  %s2910_s18 = smov [#allocation13]  }
  0x9c   : > { %s509_s10 = sshll.u32 %s2909_s4, 4  ;;  %s534_s15 = sshll.u32 %s2910_s18, 4  ;;  %s510_s10 = int_to_ptr.vmem [resolvable:$true] %s509_s10  ;;  %s535_s15 = int_to_ptr.vmem [resolvable:$true] %s534_s15 }
  0x9d   : > { %s2672_s23 = scalar_lea.hbm %s3555_s7, 512 }
  0x9e   : > { %p2673_p13 = scmp.ne.s32.totalorder %s3555_s7, %s2672_s23  ;;  %p2679_p3 = scmp.lt.u32.totalorder %s2672_s23, %s3555_s7 }
  0xa0   : > { %p2675_p0 = pnand %p2673_p13, %p3077_p8 }
  0xa2   : > { %p2676_p1 = pneg %p2675_p0 }
  0xa4   : > { %p2681_p2 = pnand %p2679_p3, %p2676_p1 }
  0xa6   : > { %2684 = shalt.err (!%p2681_p2)
}
  0xa7   : > { %s2685_s25 = scalar_lea.vmem %s510_s10, 512  ;;  %p2693_p4 = scmp.lt.s32.totalorder %s510_s10, %s510_s10 }
  0xa8   : > { %p2686_p5 = scmp.ne.s32.totalorder %s510_s10, %s2685_s25  ;;  %p2694_p10 = scmp.lt.s32.totalorder %s2685_s25, %s2685_s25 }
  0xaa   : > { %p2688_p7 = pnand %p2686_p5, %p3077_p8  ;;  %p2695_p11 = por %p2694_p10, %p2693_p4 }
  0xac   : > { %p2689_p9 = pneg %p2688_p7 }
  0xae   : > { %p2696_p12 = pnand %p2695_p11, %p2689_p9 }
  0xb0   : > { %2699 = shalt.err (!%p2696_p12)
}
  0xb1   : > { %s3597_s24 = smov 128   ;;  %s2700_s23 = scalar_lea.hbm %s3557_s9, 128 }
  0xb2   : > { %2411 = dma.hbm_to_vmem [thread:$0]  (!%p3061_p6), %s3555_s7, 512, %s510_s10, [#allocation9], %s3597_s24, %s3597_s24, %s3575_s13  }
  0xb3   : > { %p2701_p13 = scmp.ne.s32.totalorder %s3557_s9, %s2700_s23  ;;  %p2707_p3 = scmp.lt.u32.totalorder %s2700_s23, %s3557_s9 }
  0xb5   : > { %p2703_p0 = pnand %p2701_p13, %p3077_p8 }
  0xb7   : > { %p2704_p1 = pneg %p2703_p0 }
  0xb9   : > { %p2709_p2 = pnand %p2707_p3, %p2704_p1 }
  0xbb   : > { %2712 = shalt.err (!%p2709_p2)
}
  0xbc   : > { %s2713_s25 = scalar_lea.vmem %s535_s15, 128  ;;  %p2721_p4 = scmp.lt.s32.totalorder %s535_s15, %s535_s15 }
  0xbd   : > { %p2714_p5 = scmp.ne.s32.totalorder %s535_s15, %s2713_s25  ;;  %p2722_p10 = scmp.lt.s32.totalorder %s2713_s25, %s2713_s25 }
  0xbf   : > { %p2716_p7 = pnand %p2714_p5, %p3077_p8  ;;  %p2723_p11 = por %p2722_p10, %p2721_p4 }
  0xc1   : > { %p2717_p9 = pneg %p2716_p7 }
  0xc3   : > { %p2724_p12 = pnand %p2723_p11, %p2717_p9 }
  0xc5   : > { %2727 = shalt.err (!%p2724_p12)
}
  0xc6   : > { %2417 = dma.hbm_to_vmem [thread:$0]  (!%p3061_p6), %s3557_s9, 128, %s535_s15, [#allocation12]  }
  0xc7   : > { %s2911_s18 = smov [#allocation16]   ;;  %s2912_s0 = smov [#allocation17]  }
  0xc8   : > { %s558_s26 = sshll.u32 %s2911_s18, 4  ;;  %s580_s23 = sshll.u32 %s2912_s0, 4  ;;  %s559_s26 = int_to_ptr.vmem [resolvable:$true] %s558_s26  ;;  %s581_s23 = int_to_ptr.vmem [resolvable:$true] %s580_s23 }
  0xc9   : > { %s2728_s19 = scalar_lea.hbm %s3560_s12, 512 }
  0xca   : > { %p2729_p13 = scmp.ne.s32.totalorder %s3560_s12, %s2728_s19  ;;  %p2735_p3 = scmp.lt.u32.totalorder %s2728_s19, %s3560_s12 }
  0xcc   : > { %p2731_p0 = pnand %p2729_p13, %p3077_p8 }
  0xce   : > { %p2732_p1 = pneg %p2731_p0 }
  0xd0   : > { %p2737_p2 = pnand %p2735_p3, %p2732_p1 }
  0xd2   : > { %2740 = shalt.err (!%p2737_p2)
}
  0xd3   : > { %s2741_s15 = scalar_lea.vmem %s559_s26, 512  ;;  %p2749_p4 = scmp.lt.s32.totalorder %s559_s26, %s559_s26 }
  0xd4   : > { %p2742_p5 = scmp.ne.s32.totalorder %s559_s26, %s2741_s15  ;;  %p2750_p10 = scmp.lt.s32.totalorder %s2741_s15, %s2741_s15 }
  0xd6   : > { %p2744_p7 = pnand %p2742_p5, %p3077_p8  ;;  %p2751_p11 = por %p2750_p10, %p2749_p4 }
  0xd8   : > { %p2745_p9 = pneg %p2744_p7 }
  0xda   : > { %p2752_p12 = pnand %p2751_p11, %p2745_p9 }
  0xdc   : > { %2755 = shalt.err (!%p2752_p12)
}
  0xdd   : > { %s3598_s4 = smov 8   ;;  %s2756_s22 = scalar_lea.hbm %s3564_s16, 1024 }
  0xde   : > { %2423 = dma.hbm_to_vmem [thread:$0]  (!%p3061_p6), %s3560_s12, 512, %s559_s26, [#allocation15], %s3597_s24, %s3597_s24, %s3598_s4  }
  0xdf   : > { %p2757_p13 = scmp.ne.s32.totalorder %s3564_s16, %s2756_s22  ;;  %p2763_p3 = scmp.lt.u32.totalorder %s2756_s22, %s3564_s16 }
  0xe1   : > { %p2759_p0 = pnand %p2757_p13, %p3077_p8 }
  0xe3   : > { %p2760_p1 = pneg %p2759_p0 }
  0xe5   : > { %p2765_p2 = pnand %p2763_p3, %p2760_p1 }
  0xe7   : > { %2768 = shalt.err (!%p2765_p2)
}
  0xe8   : > { %s2769_s15 = scalar_lea.vmem %s581_s23, 1024  ;;  %p2777_p4 = scmp.lt.s32.totalorder %s581_s23, %s581_s23 }
  0xe9   : > { %p2770_p5 = scmp.ne.s32.totalorder %s581_s23, %s2769_s15  ;;  %p2778_p10 = scmp.lt.s32.totalorder %s2769_s15, %s2769_s15 }
  0xeb   : > { %p2772_p7 = pnand %p2770_p5, %p3077_p8  ;;  %p2779_p11 = por %p2778_p10, %p2777_p4 }
  0xed   : > { %p2773_p9 = pneg %p2772_p7 }
  0xef   : > { %p2780_p12 = pnand %p2779_p11, %p2773_p9 }
  0xf1   : > { %2783 = shalt.err (!%p2780_p12)
}
  0xf2   : > { %2426 = dma.hbm_to_vmem [thread:$0]  (!%p3061_p6), %s3564_s16, 1024, %s581_s23, [#allocation18], %s3597_s24, %s3597_s24, %s3598_s4  }
  0xf3   : > { %s2108_s2 = sadd.s32 4294967294, %s2900_s30   ;;  %s3266_s21 = sadd.s32 1, %s2900_s30  }
  0xf4   : > { %s46_s18 = sadd.s32 1, %s2896_s29  ;;  %s43_s0 = ssub.s32 %s2900_s30, %s3266_s21 }
  0xf5   : > { %p53_p8 = scmp.ne.s32.totalorder %s2896_s29, %s2892_s28  ;;  %p44_p13 = scmp.eq.s32.totalorder %s43_s0, 0 }
  0xf6   : > { %p54_p0 = scmp.eq.s32.totalorder %s2900_s30, 0  ;;  %p59_p1 = scmp.ne.s32.totalorder %s2892_s28, %s2888_s27 }
  0xf7   : > { %p440_p3 = scmp.eq.s32.totalorder %s3045_s1, 1  ;;  %p3599_p5 = scmp.eq.s32.totalorder %s3045_s1, 0 }
  0xf8   : > { %s3278_s17 = scalar_select %p44_p13, %s2896_s29, %s46_s18  }
  0xf9   : > { %p55_p2 = por %p54_p0, %p53_p8  ;;  %p3282_p7 = por %p3599_p5, %p59_p1 }
  0xfa   : > { %p3286_p6 = por %p440_p3, %p53_p8  ;;  %p446_p9 = scmp.eq.s32.totalorder %s2108_s2, 1 }
  0xfb   : > { %p2444_p4 = scmp.lt.s32.totalorder %s2900_s30, 2  ;;  %s597_s23 = sand.u32 1, %s2896_s29  }
  0xfc   : > { %s3601_s24 = scalar_select %p3286_p6, 1, 0 }
  0xfd   : > { %p3292_p10 = por %p446_p9, %p59_p1  ;;  %s2120_s19 = sshll.u32 %s597_s23, 3 }
  0xfe   : > { %s2121_s14 = sshll.u32 %s2900_s30, 7  ;;  %s3603_s15 = sld [smem:[#allocation27_spill]] }
  0xff   : > { %s3602_s4 = scalar_select %p3292_p10, 1, 0 }
 0x100   : > { %s601_s13 = scalar_lea.vmem [#allocation2], %s2120_s19  ;;  %p3302_p11 = pnand %p2444_p4, %p55_p2 }
 0x101   : > { %s608_s18 = sshll.u32 %s601_s13, 4  ;;  %s598_s0 = scalar_lea.sflag [#allocation3], %s597_s23  ;;  %s3306_s18 = int_to_ptr.vmem [resolvable:$true] %s608_s18 }
 0x102   : > { %p2786_p8 = pneg %p3302_p11 }
 0x104   : > { %s3300_s26 = scalar_lea.hbm %s3603_s15, %s2121_s14  ;;  %s2789_s25 = scalar_lea.hbm %s3603_s15, 256 }
 0x105   : > { %s2784_s3 = scalar_lea.hbm %s3300_s26, 128  ;;  %p2790_p1 = scmp.lt.u32.totalorder %s3300_s26, %s3603_s15 }
 0x106   : > { %p2785_p12 = scmp.ne.s32.totalorder %s3300_s26, %s2784_s3  ;;  %p2791_p3 = scmp.lt.u32.totalorder %s2789_s25, %s2784_s3 }
 0x107   : > { %p2793_p5 = scmp.lt.u32.totalorder %s2784_s3, %s3300_s26 }
 0x108   : > { %p2787_p13 = pnand %p2786_p8, %p2785_p12  ;;  %p2792_p2 = por %p2791_p3, %p2790_p1 }
 0x10a   : > { %p2788_p0 = pneg %p2787_p13  ;;  %p2794_p9 = por %p2793_p5, %p2792_p2 }
 0x10c   : > { %p2795_p4 = pnand %p2794_p9, %p2788_p0 }
 0x10e   : > { %2798 = shalt.err (!%p2795_p4)
}
 0x10f   : > { %s2799_s23 = scalar_lea.vmem %s3306_s18, 128  ;;  %s2913_s14 = smov [#allocation2]  }
 0x110   : > { %p2800_p12 = scmp.ne.s32.totalorder %s3306_s18, %s2799_s23  ;;  %s2804_s19 = sshll.u32 %s2913_s14, 4  ;;  %s2805_s19 = int_to_ptr.vmem [resolvable:$false] %s2804_s19 }
 0x111   : > { %s2806_s10 = scalar_lea.vmem %s2805_s19, 256  ;;  %p2807_p6 = scmp.lt.s32.totalorder %s3306_s18, %s2805_s19 }
 0x112   : > { %p2802_p13 = pnand %p2800_p12, %p2786_p8  ;;  %p2808_p1 = scmp.lt.s32.totalorder %s2806_s10, %s2799_s23 }
 0x114   : > { %p2803_p10 = pneg %p2802_p13  ;;  %p2809_p3 = por %p2808_p1, %p2807_p6 }
 0x116   : > { %p2810_p2 = pnand %p2809_p3, %p2803_p10 }
 0x118   : > { %2813 = shalt.err (!%p2810_p2)
}
 0x119   : > { %2430 = dma.hbm_to_vmem [thread:$0]  (!%p3302_p11), %s3300_s26, 128, %s3306_s18, %s598_s0  }
 0x11a   : > { %p3605_p0 = scmp.ne.s32.totalorder %s3591_s20, 0 }
 0x11b   : > { %s3336_s3 = sand.u32 (!%p3605_p0), 1, %s2892_s28  }
 0x11c   : > { %617 = sbr.rel (%p3605_p0) target bundleno = 2519 (0x9d7), region = 92  ;;  %s2123_s25 = sshll.u32 (!%p3605_p0), %s3336_s3, 3 }
 0x11d   : > { %s620_s13 = scalar_lea.sflag (!%p3605_p0), [#allocation3], %s3336_s3  ;;  %s623_s23 = scalar_lea.vmem (!%p3605_p0), [#allocation2], %s2123_s25 }
 0x123   : > { %2859 = dma.done.wait (%p3282_p7), %s620_s13, 128  }
 0x124   : > { %2861 = vsyncadd (%p3282_p7), %s620_s13, 4294967168  ;;  %p3606_p6 = scmp.eq.s32.totalorder %s3045_s1, 0 }
 0x126   : > { %2863 = dma.done.wait (%p3606_p6), [#allocation6], 640   ;;  %p3607_p10 = pmov %p3606_p6 }
 0x127   : > { %p3608_p11 = pmov %p3606_p6 }
 0x128   : > { %2865 = vsyncadd (%p3607_p10), [#allocation6], 4294966656 }
 0x129   : > { %2867 = dma.done.wait (%p3608_p11), [#allocation9], 640   ;;  %p3609_p8 = pmov %p3606_p6 }
 0x12a   : > { %p3610_p5 = pmov %p3606_p6 }
 0x12b   : > { %2869 = vsyncadd (%p3609_p8), [#allocation9], 4294966656 }
 0x12c   : > { %2871 = dma.done.wait (%p3610_p5), [#allocation12], 256   ;;  %p3611_p9 = pmov %p3610_p5 }
 0x12d   : > { %p3612_p7 = pmov %p3610_p5 }
 0x12e   : > { %2873 = vsyncadd (%p3611_p9), [#allocation12], 4294967040 }
 0x12f   : > { %2875 = dma.done.wait (%p3612_p7), [#allocation15], 640   ;;  %p3613_p4 = pmov %p3610_p5 }
 0x131   : > { %2877 = vsyncadd (%p3613_p4), [#allocation15], 4294966656  ;;  %p3614_p12 = pmov %p3613_p4 }
 0x132   : > { %p3615_p13 = pmov %p3613_p4 }
 0x133   : > { %2879 = dma.done.wait (%p3614_p12), [#allocation18], 1024  }
 0x134   : > { %2881 = vsyncadd (%p3615_p13), [#allocation18], 4294966272  ;;  %vm713_vm0 = vcmask 261120   ;;  %v3366_v0 = vld [vmem:[%s623_s23] sm:$0xff]  ;;  %v744_v7 = vld [vmem:[#allocation5] sm:$0xff]  ;;  %v2914_v10 = vmov 0.0|0.0  }
 0x135   : > { %v714_v1 = vsel %vm713_vm0, %v3366_v0, 0.0  ;;  %v745_v8 = vld [vmem:[#allocation5 + $0x8] sm:$0xff]  ;;  %v746_v9 = vld [vmem:[#allocation5 + $0x10] sm:$0xff]  ;;  %2320 = vmatprep.subr.bf16.mxu0 %v2914_v10  ;;  %v747_v12 = vld [vmem:[#allocation5 + $0x18] sm:$0xff]  ;;  %vm2915_vm1 = vmmov 0   ;;  %v2916_v13 = vmov 0.0  }
 0x136   : > { %715 = vadd.xlane.f32.xlu0 %v714_v1  ;;  %v2321_v11 = vpack.c.bf16 %v745_v8, %v744_v7  ;;  %2218 = vmatprep.mubr.msk.f32.mxu0 %vm2915_vm1, %v2916_v13  ;;  %v2324_v14 = vpack.c.bf16 %v747_v12, %v746_v9  ;;  %s3616_s26 = sld [smem:[#allocation28_spill]]  ;;  %v830_v21 = vld [vmem:[#allocation10] sm:$0xff]  ;;  %v831_v22 = vld [vmem:[#allocation10 + $0x8] sm:$0xff]  ;;  %s3617_s0 = sld [smem:[#allocation29_spill]]  ;;  %v832_v27 = vld [vmem:[#allocation10 + $0x10] sm:$0xff]  ;;  %vm920_vm2 = vcmask 130048  }
 0x137   : > { %2239 = vmatprep.subr.mxu1 %v2916_v13  ;;  %2241 = vmatprep.mubr.msk.f32.mxu1 %vm2915_vm1, %v2916_v13  ;;  %v2327_v25 = vpack.c.bf16 %v831_v22, %v830_v21  ;;  %v833_v28 = vld [vmem:[#allocation10 + $0x18] sm:$0xff]  ;;  %s3618_s10 = sld [smem:[#allocation34_spill]]  ;;  %s2917_s18 = smov 96   ;;  %v910_v37 = vld [vmem:[#allocation11] sm:$0xff]  ;;  %v993_v41 = vld [vmem:[#allocation13] sm:$0xff]  ;;  %vm1004_vm3 = vcmask 64512  }
 0x138   : > { %2322 = vmatpush3.bf16.msra.mxu0 %v2321_v11  ;;  %v2330_v29 = vpack.c.bf16 %v833_v28, %v832_v27  ;;  %s2918_s2 = smov 32   ;;  %v907_v46 = vld [vmem:[#allocation8] sm:$0xff]  ;;  %v828_v48 = vld [vmem:[#allocation7] sm:$0xff]  ;;  %s2920_s14 = smov 88   ;;  %vm1670_vm4 = vcmask 195584   ;;  %vm1861_vm5 = vcmask 523264  }
 0x139   : > { %2323 = vmatprep.subr.bf16.mxu0 %v2914_v10  ;;  %s2921_s19 = smov 112   ;;  %s2922_s13 = smov 104   ;;  %v1000_v60 = vld [vmem:[#allocation14] sm:$0xff] }
 0x13a   : > { %s2923_s23 = smov 72   ;;  %s2924_s20 = smov 80  }
 0x13b   : > { %s2926_s22 = smov 16   ;;  %p3625_p3 = scmp.ne.s32.totalorder %s3601_s24, 0 }
 0x13c   : > { %2325 = vmatpush3.bf16.msra.mxu0 %v2324_v14  ;;  %v2134_v19 = vld [vmem:[%s3616_s26] ss:$0 sm:$0xff]  ;;  %s3619_s26 = sld [smem:[#allocation31_spill]] }
 0x13d   : > { %2326 = vmatprep.subr.bf16.mxu0 %v2914_v10  ;;  %v2135_v23 = vld [vmem:[%s3617_s0] ss:$0 sm:$0xff]  ;;  %v917_v31 = vld [vmem:[%s3618_s10 + $0x8] sm:$0xff]  ;;  %s2919_s0 = smov 120  }
 0x13e   : > { %v916_v30 = vld [vmem:[%s3618_s10] sm:$0xff] }
 0x13f   : > { %v2333_v34 = vpack.c.bf16 %v917_v31, %v916_v30 }
 0x142   : > { %v2136_v32 = vld [vmem:[%s3619_s26] ss:$0 sm:$0xff]  ;;  %s2927_s26 = smov 24  }
 0x1c3   : > { %v716_v2 = vpop.xlane.xlu0 %715 }
 0x1c4   : > { %v718_v3 = vmul.f32 0.03125, %v716_v2 }
 0x1c6   : > { %v719_v4 = vsub.f32 %v3366_v0, %v718_v3 }
 0x1c8   : > { %v720_v5 = vmul.f32 %v719_v4, %v719_v4 }
 0x1ca   : > { %v721_v6 = vsel %vm713_vm0, %v720_v5, 0.0 }
 0x1cb   : > { %722 = vadd.xlane.f32.xlu0 %v721_v6 }
 0x258   : > { %v723_v15 = vpop.xlane.xlu0 %722 }
 0x259   : > { %v724_v16 = vmul.f32 0.03125, %v723_v15 }
 0x25b   : > { %v725_v17 = vadd.f32 1e-05, %v724_v16 }
 0x25d   : > { %2512 = vrsqrt.f32 %v725_v17 }
 0x267   : > { %v2513_v18 = vpop.eup %2512 }
 0x268   : > { %v727_v20 = vmul.f32 %v2513_v18, %v719_v4 }
 0x26a   : > { %v735_v24 = vmul.f32 %v2134_v19, %v727_v20 }
 0x26c   : > { %v3386_v26 = vadd.f32 %v2135_v23, %v735_v24 }
 0x26e   : > { %2219 = vmatmul.mubr.msk.f32.vlgmr.msra.gmra.mrb[0].mxu0 %vm713_vm0, %v3386_v26 }
 0x26f   : > { %2328 = vmatpush3.bf16.msra.mxu0 %v2327_v25  ;;  %2229 = vmatprep.mubr.msk.f32.mxu0 %vm2915_vm1, %v2916_v13 }
 0x270   : > { %2329 = vmatprep.subr.bf16.mxu0 %v2914_v10 }
 0x273   : > { %2331 = vmatpush3.bf16.msra.mxu0 %v2330_v29 }
 0x274   : > { %2332 = vmatprep.subr.bf16.mxu0 %v2914_v10 }
 0x341   : > { %v824_v33 = vpop.f32.mrb[0].mxu0 }
 0x342   : > { %v3403_v35 = vadd.f32 %v2136_v32, %v824_v33  ;;  %v2220_v36 = vpop.f32.mrb[1].mxu0 }
 0x344   : > { %918 = vrot.lane.b32.xlu1 %v3403_v35, %s2917_s18  ;;  %2230 = vmatmul.mubr.msk.f32.vlgmr.msra.gmra.mrb[2].mxu0 %vm713_vm0, %v3403_v35  ;;  %v829_v52 = vmul.f32 %v828_v48, %v3403_v35 }
 0x345   : > { %2334 = vmatpush3.bf16.msra.mxu0 %v2333_v34  ;;  %2236 = vmatprep.mubr.msk.f32.mxu0 %vm2915_vm1, %v2916_v13 }
 0x346   : > { %2244 = vmatprep.subr.mxu0 %v2916_v13 }
 0x348   : > { %912 = vrot.lane.b32.xlu1 %v910_v37, %s2918_s2 }
 0x3b6   : > { %v919_v38 = vpop.permute.xlu1 %918 }
 0x3b7   : > { %2237 = vmatmul.mubr.msk.f32.vlgmr.msra.gmra.mrb[4].mxu0 %vm920_vm2, %v919_v38 }
 0x3b8   : > { %2246 = vmatprep.mubr.msk.f32.mxu0 %vm2915_vm1, %v2916_v13 }
 0x3ba   : > { %v913_v45 = vpop.permute.xlu1 %912 }
 0x3bb   : > { %v915_v47 = vmul.f32 %v913_v45, %v3403_v35 }
 0x417   : > { %v903_v39 = vpop.f32.mrb[2].mxu0 }
 0x418   : > { %v2231_v40 = vpop.f32.mrb[3].mxu0  ;;  %v908_v50 = vmul.f32 %v907_v46, %v903_v39 }
 0x41a   : > { %v909_v53 = vadd.f32 %v908_v50, %v829_v52 }
 0x48a   : > { %v989_v42 = vpop.f32.mrb[4].mxu0 }
 0x48b   : > { %v994_v43 = vmul.f32 %v993_v41, %v989_v42  ;;  %v2238_v44 = vpop.f32.mrb[5].mxu0 }
 0x48d   : > { %996 = vrot.lane.b32.xlu0 %v994_v43, %s2918_s2  ;;  %s2159_s2 = sshll.u32 %s3045_s1, 7 }
 0x4ff   : > { %v997_v49 = vpop.permute.xlu0 %996 }
 0x500   : > { %v999_v51 = vadd.f32 %v997_v49, %v915_v47 }
 0x502   : > { %1002 = vrot.lane.b32.xlu1 %v999_v51, %s2917_s18  ;;  %s3620_s18 = sld [smem:[#allocation36_spill]] }
 0x506   : > { %1169 = vrot.lane.b32.xlu1 %v909_v53, %s2919_s0  ;;  %s711_s0 = scalar_lea.vmem [#allocation19], %s2123_s25  ;;  %s2928_s25 = smov [#allocation19]  }
 0x508   : > { %v1756_v52 = vld [vmem:[%s3620_s18] sm:$0xff] }
 0x50a   : > { %1331 = vrot.lane.b32.xlu1 %v999_v51, %s2920_s14  ;;  %s3621_s14 = sld [smem:[#allocation37_spill]] }
 0x50e   : > { %1329 = vrot.lane.b32.xlu1 %v909_v53, %s2921_s19  ;;  %s3624_s19 = sld [smem:[#allocation39_spill]] }
 0x512   : > { %1496 = vrot.lane.b32.xlu1 %v909_v53, %s2922_s13 }
 0x514   : > { %s3503_s13 = scalar_lea.hbm %s3624_s19, %s2159_s2 }
 0x574   : > { %v1003_v54 = vpop.permute.xlu1 %1002 }
 0x575   : > { %2240 = vmatpush3.xpose.msk.msra.mxu1 %vm1004_vm3, %v1003_v54 }
 0x576   : > { %2249 = vmatprep.subr.mxu1 %v2916_v13 }
 0x578   : > { %2242 = vmatmul.mubr.msk.f32.vlgmr.msra.gmra.mrb[0].mxu1 %vm1004_vm3, %v909_v53  ;;  %v1170_v55 = vpop.permute.xlu1 %1169  ;;  %v1757_v53 = vld [vmem:[%s3620_s18 + $0x8] sm:$0xff] }
 0x579   : > { %2250 = vmatpush3.xpose.msk.msra.mxu1 %vm1004_vm3, %v1003_v54  ;;  %2251 = vmatprep.mubr.msk.f32.mxu1 %vm2915_vm1, %v2916_v13 }
 0x57a   : > { %2259 = vmatprep.subr.mxu1 %v2916_v13 }
 0x57c   : > { %2252 = vmatmul.mubr.msk.f32.vlgmr.msra.gmra.mrb[2].mxu1 %vm1004_vm3, %v1170_v55  ;;  %v1332_v56 = vpop.permute.xlu1 %1331  ;;  %v2342_v55 = vpack.c.bf16 %v1757_v53, %v1756_v52 }
 0x57d   : > { %2260 = vmatpush3.xpose.msk.msra.mxu1 %vm1004_vm3, %v1332_v56  ;;  %2261 = vmatprep.mubr.msk.f32.mxu1 %vm2915_vm1, %v2916_v13 }
 0x57e   : > { %2269 = vmatprep.subr.mxu1 %v2916_v13 }
 0x580   : > { %v1330_v57 = vpop.permute.xlu1 %1329 }
 0x581   : > { %2262 = vmatmul.mubr.msk.f32.vlgmr.msra.gmra.mrb[4].mxu1 %vm1004_vm3, %v1330_v57  ;;  %v1758_v57 = vld [vmem:[%s3620_s18 + $0x10] sm:$0xff] }
 0x582   : > { %2270 = vmatpush3.xpose.msk.msra.mxu1 %vm1004_vm3, %v1332_v56  ;;  %2271 = vmatprep.mubr.msk.f32.mxu1 %vm2915_vm1, %v2916_v13 }
 0x583   : > { %2335 = vmatprep.subr.bf16.mxu1 %v2914_v10 }
 0x584   : > { %v1497_v58 = vpop.permute.xlu1 %1496 }
 0x585   : > { %2272 = vmatmul.mubr.msk.f32.vlgmr.msra.gmra.mrb[6].mxu1 %vm1004_vm3, %v1497_v58  ;;  %v1759_v58 = vld [vmem:[%s3620_s18 + $0x18] sm:$0xff] }
 0x586   : > { %2287 = vmatprep.mubr.msk.f32.mxu1 %vm2915_vm1, %v2916_v13 }
 0x64b   : > { %v1076_v59 = vpop.f32.mrb[0].mxu1 }
 0x64c   : > { %v1080_v61 = vmul.f32 0.35355338, %v1076_v59  ;;  %v2243_v62 = vpop.f32.mrb[1].mxu1  ;;  %v2345_v59 = vpack.c.bf16 %v1759_v58, %v1758_v57 }
 0x64e   : > { %v1081_v63 = vadd.f32 %v1080_v61, %v1000_v60  ;;  %v1673_v61 = vld [vmem:[#allocation16 + $0x8] sm:$0xff] }
 0x64f   : > { %v1239_v1 = vpop.f32.mrb[2].mxu1 }
 0x650   : > { %v1243_v2 = vmul.f32 0.35355338, %v1239_v1  ;;  %v2253_v3 = vpop.f32.mrb[3].mxu1  ;;  %v1082_v4 = vsel %vm1004_vm3, %v1081_v63, -inf  ;;  %v1675_v1 = vld [vmem:[#allocation16 + $0x18] sm:$0xff] }
 0x651   : > { %1083 = vmax.xlane.f32.xlu1 %v1082_v4 }
 0x652   : > { %v1244_v5 = vadd.f32 %v1243_v2, %v1000_v60 }
 0x654   : > { %v1403_v6 = vpop.f32.mrb[4].mxu1  ;;  %v1245_v7 = vsel %vm1004_vm3, %v1244_v5, -inf }
 0x655   : > { %v1407_v8 = vmul.f32 0.35355338, %v1403_v6  ;;  %1246 = vmax.xlane.f32.xlu0 %v1245_v7  ;;  %v2263_v9 = vpop.f32.mrb[5].mxu1 }
 0x657   : > { %v1408_v11 = vadd.f32 %v1407_v8, %v1000_v60 }
 0x658   : > { %v1566_v12 = vpop.f32.mrb[6].mxu1 }
 0x659   : > { %v1570_v14 = vmul.f32 0.35355338, %v1566_v12  ;;  %v2273_v15 = vpop.f32.mrb[7].mxu1  ;;  %v1409_v16 = vsel %vm1004_vm3, %v1408_v11, -inf }
 0x65a   : > { %1410 = vmax.xlane.f32.xlu0 %v1409_v16 }
 0x65b   : > { %v1571_v17 = vadd.f32 %v1570_v14, %v1000_v60  ;;  %v1672_v60 = vld [vmem:[#allocation16] sm:$0xff]  ;;  %v2154_v14 = vld [vmem:[%s3621_s14] ss:$0 sm:$0xff]  ;;  %s1952_s14 = sshll.u32 %s711_s0, 4  ;;  %s3505_s14 = int_to_ptr.vmem [resolvable:$true] %s1952_s14 }
 0x65c   : > { %v2336_v62 = vpack.c.bf16 %v1673_v61, %v1672_v60  ;;  %s2814_s1 = scalar_lea.vmem %s3505_s14, 128 }
 0x65d   : > { %v1572_v18 = vsel %vm1004_vm3, %v1571_v17, -inf  ;;  %p2815_p1 = scmp.ne.s32.totalorder %s3505_s14, %s2814_s1 }
 0x65e   : > { %1573 = vmax.xlane.f32.xlu1 %v1572_v18  ;;  %2337 = vmatpush3.bf16.msra.mxu1 %v2336_v62 }
 0x65f   : > { %2338 = vmatprep.subr.bf16.mxu1 %v2914_v10  ;;  %p2816_p2 = pnand %p2815_p1, %p3625_p3 }
 0x661   : > { %p2817_p0 = pneg %p2816_p2 }
 0x6de   : > { %v1084_v19 = vpop.xlane.xlu1 %1083 }
 0x6df   : > { %v1085_v20 = vsub.f32 %v1081_v63, %v1084_v19  ;;  %v1674_v63 = vld [vmem:[#allocation16 + $0x10] sm:$0xff] }
 0x6e0   : > { %v2339_v2 = vpack.c.bf16 %v1675_v1, %v1674_v63 }
 0x6e1   : > { %v1086_v21 = vmul.f32 1.442695, %v1085_v20 }
 0x6e2   : > { %v1247_v22 = vpop.xlane.xlu0 %1246  ;;  %2340 = vmatpush3.bf16.msra.mxu1 %v2339_v2 }
 0x6e3   : > { %2514 = vpow2.f32 %v1086_v21  ;;  %v1248_v23 = vsub.f32 %v1244_v5, %v1247_v22  ;;  %2347 = vmatprep.subr.bf16.mxu1 %v2914_v10  ;;  %v1846_v22 = vld [vmem:[#allocation17] sm:$0xff] }
 0x6e5   : > { %v1249_v24 = vmul.f32 1.442695, %v1248_v23  ;;  %v1847_v23 = vld [vmem:[#allocation17 + $0x8] sm:$0xff] }
 0x6e7   : > { %2516 = vpow2.f32 %v1249_v24  ;;  %v1411_v25 = vpop.xlane.xlu0 %1410 }
 0x6e8   : > { %v1412_v27 = vsub.f32 %v1408_v11, %v1411_v25 }
 0x6ea   : > { %v1413_v28 = vmul.f32 1.442695, %v1412_v27  ;;  %v2348_v27 = vpack.c.bf16 %v1847_v23, %v1846_v22 }
 0x6eb   : > { %v1574_v29 = vpop.xlane.xlu1 %1573 }
 0x6ec   : > { %2518 = vpow2.f32 %v1413_v28  ;;  %v1575_v30 = vsub.f32 %v1571_v17, %v1574_v29 }
 0x6ed   : > { %v2515_v31 = vpop.eup %2514 }
 0x6ee   : > { %v1576_v32 = vmul.f32 1.442695, %v1575_v30  ;;  %v1088_v33 = vsel %vm1004_vm3, %v2515_v31, 0.0  ;;  %v1848_v30 = vld [vmem:[#allocation17 + $0x10] sm:$0xff] }
 0x6ef   : > { %1089 = vadd.xlane.f32.xlu0 %v1088_v33 }
 0x6f0   : > { %2520 = vpow2.f32 %v1576_v32 }
 0x6f1   : > { %v2517_v34 = vpop.eup %2516 }
 0x6f2   : > { %v1251_v36 = vsel %vm1004_vm3, %v2517_v34, 0.0 }
 0x6f3   : > { %1252 = vadd.xlane.f32.xlu1 %v1251_v36  ;;  %v1851_v36 = vld [vmem:[#allocation17 + $0x28] sm:$0xff] }
 0x6f6   : > { %v2519_v37 = vpop.eup %2518 }
 0x6f7   : > { %v1415_v38 = vsel %vm1004_vm3, %v2519_v37, 0.0 }
 0x6f8   : > { %1416 = vadd.xlane.f32.xlu0 %v1415_v38 }
 0x6fa   : > { %v2521_v39 = vpop.eup %2520 }
 0x6fb   : > { %v1578_v40 = vsel %vm1004_vm3, %v2521_v39, 0.0 }
 0x6fc   : > { %1579 = vadd.xlane.f32.xlu1 %v1578_v40  ;;  %v1852_v40 = vld [vmem:[#allocation17 + $0x30] sm:$0xff] }
 0x70d   : > { %1420 = vrot.lane.b32.xlu1 %v3403_v35, %s2923_s23  ;;  %s3622_s23 = sld [smem:[#allocation35_spill]] }
 0x70e   : > { %1093 = vrot.lane.b32.xlu0 %v3403_v35, %s2924_s20  ;;  %s2925_s20 = smov 8  }
 0x77c   : > { %v1090_v41 = vpop.xlane.xlu0 %1089 }
 0x77d   : > { %2522 = vrcp.f32 %v1090_v41  ;;  %v1853_v41 = vld [vmem:[#allocation17 + $0x38] sm:$0xff] }
 0x780   : > { %v1253_v42 = vpop.xlane.xlu1 %1252 }
 0x781   : > { %2524 = vrcp.f32 %v1253_v42  ;;  %v2357_v42 = vpack.c.bf16 %v1853_v41, %v1852_v40 }
 0x785   : > { %v1417_v43 = vpop.xlane.xlu0 %1416 }
 0x786   : > { %2526 = vrcp.f32 %v1417_v43 }
 0x787   : > { %v2523_v44 = vpop.eup %2522 }
 0x788   : > { %v1092_v45 = vmul.f32 %v2523_v44, %v2515_v31  ;;  %v1849_v31 = vld [vmem:[#allocation17 + $0x18] sm:$0xff] }
 0x789   : > { %v1094_v46 = vpop.permute.xlu0 %1093  ;;  %v1580_v47 = vpop.xlane.xlu1 %1579  ;;  %v2351_v33 = vpack.c.bf16 %v1849_v31, %v1848_v30 }
 0x78a   : > { %2528 = vrcp.f32 %v1580_v47  ;;  %2245 = vmatpush3.msra.mxu0 %v1094_v46 }
 0x78b   : > { %v2525_v48 = vpop.eup %2524  ;;  %2247 = vmatmul.mubr.msk.f32.vlgmr.msra.gmra.mrb[6].mxu0 %vm1004_vm3, %v1092_v45  ;;  %2254 = vmatprep.subr.mxu0 %v2916_v13 }
 0x78c   : > { %v1255_v49 = vmul.f32 %v2525_v48, %v2517_v34  ;;  %2255 = vmatpush3.msra.mxu0 %v1094_v46  ;;  %2256 = vmatprep.mubr.msk.f32.mxu0 %vm2915_vm1, %v2916_v13  ;;  %v1850_v34 = vld [vmem:[#allocation17 + $0x20] sm:$0xff]  ;;  %v2152_v46 = vld [vmem:[%s3622_s23] ss:$0 sm:$0xff]  ;;  %s1939_s23 = scalar_lea.sflag [#allocation4], %s3336_s3 }
 0x78d   : > { %v1421_v35 = vpop.permute.xlu1 %1420  ;;  %2264 = vmatprep.subr.mxu0 %v2916_v13  ;;  %v2354_v38 = vpack.c.bf16 %v1851_v36, %v1850_v34 }
 0x78f   : > { %2257 = vmatmul.mubr.msk.f32.vlgmr.msra.gmra.mrb[8].mxu0 %vm1004_vm3, %v1255_v49 }
 0x790   : > { %v2527_v50 = vpop.eup %2526  ;;  %2265 = vmatpush3.msra.mxu0 %v1421_v35  ;;  %2266 = vmatprep.mubr.msk.f32.mxu0 %vm2915_vm1, %v2916_v13 }
 0x791   : > { %v1419_v51 = vmul.f32 %v2527_v50, %v2519_v37  ;;  %2274 = vmatprep.subr.mxu0 %v2916_v13 }
 0x793   : > { %2267 = vmatmul.mubr.msk.f32.vlgmr.msra.gmra.mrb[10].mxu0 %vm1004_vm3, %v1419_v51 }
 0x794   : > { %v2529_v54 = vpop.eup %2528  ;;  %2275 = vmatpush3.msra.mxu0 %v1421_v35  ;;  %2276 = vmatprep.mubr.msk.f32.mxu0 %vm2915_vm1, %v2916_v13 }
 0x795   : > { %v1582_v56 = vmul.f32 %v2529_v54, %v2521_v39  ;;  %2341 = vmatprep.subr.bf16.mxu0 %v2914_v10 }
 0x797   : > { %2277 = vmatmul.mubr.msk.f32.vlgmr.msra.gmra.mrb[12].mxu0 %vm1004_vm3, %v1582_v56 }
 0x798   : > { %2343 = vmatpush3.bf16.msra.mxu0 %v2342_v55  ;;  %2298 = vmatprep.mubr.msk.f32.mxu0 %vm2915_vm1, %v2916_v13 }
 0x799   : > { %2344 = vmatprep.subr.bf16.mxu0 %v2914_v10 }
 0x79c   : > { %2346 = vmatpush3.bf16.msra.mxu0 %v2345_v59 }
 0x79f   : > { %2299 = vmatmul.mubr.msk.f32.vlgmr.msra.gmra.mrb[14].mxu0 %vm713_vm0, %v3386_v26 }
 0x85e   : > { %v1165_v3 = vpop.f32.mrb[6].mxu0 }
 0x85f   : > { %v2248_v4 = vpop.f32.mrb[7].mxu0 }
 0x862   : > { %v1325_v5 = vpop.f32.mrb[8].mxu0 }
 0x863   : > { %1657 = vrot.lane.b32.xlu1 %v1325_v5, %s2925_s20  ;;  %v2258_v6 = vpop.f32.mrb[9].mxu0  ;;  %s2818_s20 = sshll.u32 %s2928_s25, 4  ;;  %s2819_s20 = int_to_ptr.vmem [resolvable:$false] %s2818_s20 }
 0x864   : > { %p2821_p6 = scmp.lt.s32.totalorder %s3505_s14, %s2819_s20 }
 0x866   : > { %v1492_v7 = vpop.f32.mrb[10].mxu0 }
 0x867   : > { %1661 = vrot.lane.b32.xlu0 %v1492_v7, %s2926_s22  ;;  %v2268_v26 = vpop.f32.mrb[11].mxu0  ;;  %s2820_s22 = scalar_lea.vmem %s2819_s20, 256 }
 0x868   : > { %p2822_p10 = scmp.lt.s32.totalorder %s2820_s22, %s2814_s1 }
 0x86a   : > { %v1652_v8 = vpop.f32.mrb[12].mxu0  ;;  %p2823_p11 = por %p2822_p10, %p2821_p6 }
 0x86b   : > { %1665 = vrot.lane.b32.xlu1 %v1652_v8, %s2927_s26  ;;  %v2278_v9 = vpop.f32.mrb[13].mxu0  ;;  %s3623_s26 = sld [smem:[#allocation38_spill]] }
 0x86c   : > { %p2824_p8 = pnand %p2823_p11, %p2817_p0 }
 0x871   : > { %v2156_v47 = vld [vmem:[%s3623_s26] ss:$0 sm:$0xff] }
 0x872   : > { %v1833_v11 = vpop.f32.mrb[14].mxu0 }
 0x873   : > { %v2300_v12 = vpop.f32.mrb[15].mxu0  ;;  %v1834_v15 = vadd.f32 %v2154_v14, %v1833_v11 }
 0x875   : > { %v1837_v16 = vmul.f32 %v1834_v15, %v1834_v15 }
 0x877   : > { %v1838_v17 = vmul.f32 %v1837_v16, %v1834_v15 }
 0x879   : > { %v1839_v18 = vmul.f32 0.044715, %v1838_v17 }
 0x87b   : > { %v1840_v19 = vadd.f32 %v1839_v18, %v1834_v15 }
 0x87d   : > { %v1841_v20 = vmul.f32 0.7978846, %v1840_v19 }
 0x87f   : > { %2530 = vtanh.f32 %v1841_v20 }
 0x889   : > { %v2531_v37 = vpop.eup %2530 }
 0x88a   : > { %v1843_v39 = vadd.f32 1.0, %v2531_v37 }
 0x88c   : > { %v1844_v43 = vmul.f32 0.5, %v1843_v39 }
 0x8d5   : > { %v1658_v21 = vpop.permute.xlu1 %1657 }
 0x8d6   : > { %v1668_v25 = vsel %vm1004_vm3, %v1165_v3, %v1658_v21 }
 0x8d9   : > { %v1662_v24 = vpop.permute.xlu0 %1661 }
 0x8da   : > { %v1669_v28 = vsel %vm920_vm2, %v1668_v25, %v1662_v24 }
 0x8dd   : > { %v1666_v29 = vpop.permute.xlu1 %1665 }
 0x8de   : > { %v1671_v32 = vsel %vm1670_vm4, %v1669_v28, %v1666_v29 }
 0x8df   : > { %2288 = vmatmul.mubr.msk.f32.vlgmr.msra.gmra.mrb[8].mxu1 %vm713_vm0, %v1671_v32 }
 0x8e0   : > { %2349 = vmatpush3.bf16.msra.mxu1 %v2348_v27  ;;  %2317 = vmatprep.mubr.msk.f32.mxu1 %vm2915_vm1, %v2916_v13  ;;  %v1845_v13 = vmul.f32 %v1844_v43, %v1834_v15 }
 0x8e1   : > { %2350 = vmatprep.subr.bf16.mxu1 %v2914_v10 }
 0x8e4   : > { %2352 = vmatpush3.bf16.msra.mxu1 %v2351_v33 }
 0x8e5   : > { %2353 = vmatprep.subr.bf16.mxu1 %v2914_v10 }
 0x8e8   : > { %2355 = vmatpush3.bf16.msra.mxu1 %v2354_v38 }
 0x8e9   : > { %2356 = vmatprep.subr.bf16.mxu1 %v2914_v10 }
 0x8ec   : > { %2358 = vmatpush3.bf16.msra.mxu1 %v2357_v42 }
 0x8ef   : > { %2318 = vmatmul.mubr.msk.f32.vlgmr.msra.gmra.mrb[10].mxu1 %vm1861_vm5, %v1845_v13 }
 0x9b2   : > { %v1752_v44 = vpop.f32.mrb[8].mxu1 }
 0x9b3   : > { %v2289_v45 = vpop.f32.mrb[9].mxu1  ;;  %v1753_v49 = vadd.f32 %v2152_v46, %v1752_v44 }
 0x9c2   : > { %v1931_v48 = vpop.f32.mrb[10].mxu1 }
 0x9c3   : > { %v1932_v35 = vadd.f32 %v2156_v47, %v1931_v48  ;;  %v2319_v10 = vpop.f32.mrb[11].mxu1 }
 0x9c5   : > { %v1935_v50 = vadd.f32 %v1932_v35, %v1753_v49 }
 0x9c7   : > { %v1936_v51 = vadd.f32 %v1935_v50, %v3366_v0 }
 0x9c9   : > { %1937 = vst.msk [vmem:[%s711_s0] sm:$0xff] %vm713_vm0, %v1936_v51 }
 0x9ca   : > { %2827 = shalt.err (!%p2824_p8)
}
 0x9cb   : > { %s2828_s5 = scalar_lea.hbm %s3503_s13, 128  ;;  %s2832_s26 = scalar_lea.hbm %s3624_s19, 256 }
 0x9cc   : > { %p2829_p5 = scmp.ne.s32.totalorder %s3503_s13, %s2828_s5  ;;  %p2833_p4 = scmp.lt.u32.totalorder %s3503_s13, %s3624_s19 }
 0x9cd   : > { %p2834_p12 = scmp.lt.u32.totalorder %s2832_s26, %s2828_s5  ;;  %p2836_p1 = scmp.lt.u32.totalorder %s2828_s5, %s3503_s13 }
 0x9ce   : > { %p2830_p9 = pnand %p2829_p5, %p3625_p3 }
 0x9cf   : > { %p2835_p13 = por %p2834_p12, %p2833_p4 }
 0x9d0   : > { %p2831_p7 = pneg %p2830_p9 }
 0x9d1   : > { %p2837_p2 = por %p2836_p1, %p2835_p13 }
 0x9d3   : > { %p2838_p0 = pnand %p2837_p2, %p2831_p7 }
 0x9d5   : > { %2841 = shalt.err (!%p2838_p0)
}
 0x9d6   : > { %2397 = dma.vmem_to_hbm [thread:$0]  (%p3625_p3), %s3505_s14, 128, %s3503_s13, %s1939_s23  }
 0x9d7 PF: > { %s1964_s1 = sand.u32 1, %s2888_s27   ;;  %p3626_p6 = scmp.ne.s32.totalorder %s3602_s4, 0 }
 0x9d8   : > { %p3627_p10 = scmp.ge.s32.totalorder %s2900_s30, 2  ;;  %s1965_s25 = scalar_lea.sflag [#allocation4], %s1964_s1 }
 0x9da   : > { %p2432_p11 = pnand %p3627_p10, %p3626_p6 }
 0x9dc   : > { %2883 = dma.done.wait (!%p2432_p11), %s1965_s25, 128  }
 0x9dd   : > { %2885 = vsyncadd (!%p2432_p11), %s1965_s25, 4294967168  ;;  %p36_p8 = scmp.ge.s32.totalorder %s3266_s21, 4   ;;  %s3628_s27 = smov %s2892_s28 }
 0x9de   : > { %s3629_s28 = smov %s2896_s29  ;;  %s3630_s29 = smov %s3278_s17 }
 0x9df   : > { %s3631_s30 = smov %s3266_s21  ;;  %38 = sbr.rel (!%p36_p8) target bundleno = 24 (0x18), region = 173 }
 0x9e6   :  { %1970 = vsyncpa [#allocation3], 1 }
 0x9e7   :  { %1972 = vsyncpa [#allocation3 + $0x1], 1 }
 0x9e8   :  { %1973 = vsyncpa [#allocation6], 1 }
 0x9e9   :  { %1974 = vsyncpa [#allocation9], 1 }
 0x9ea   :  { %1975 = vsyncpa [#allocation12], 1 }
 0x9eb   :  { %1976 = vsyncpa [#allocation15], 1 }
 0x9ec   :  { %1977 = vsyncpa [#allocation18], 1 }
 0x9ed   :  { %1978 = vsyncpa [#allocation4], 1 }
 0x9ee   :  { %1980 = vsyncpa [#allocation4 + $0x1], 1 }

</bundles_post_ra>
